<compile_context>
chip_gen: v6e
topology: v6e:2x2x1
jax: 0.10.0
libtpu: 0.0.40
codegen_flags: <defaults>
</compile_context>

<pallas_src>
import jax
import jax.numpy as jnp
from jax import lax
from jax.experimental import pallas as pl
from jax.experimental.pallas import tpu as pltpu


def mlp_kernel(x_ref,
               w1_ref, b1_ref,
               w2_ref, b2_ref,
               w3_ref, b3_ref,
               w4_ref, b4_ref,
               o_ref):
    # x_ref: (TB, F) f32, natural layout.  Cast to bf16 here (saves a wrapper-side
    # HBM pass over the only batch-scaled tensor).
    x = x_ref[...].astype(jnp.bfloat16)                               # (TB, F)

    # Layer 1: Linear(F, 512) + ReLU   (Dropout(0.3) is identity in eval).
    # Contract on x's axis 1 (q@k.T-style) so the batch lands on the LANE axis of
    # every intermediate: result is (512, TB).
    h1 = lax.dot_general(w1_ref[...], x,
                         dimension_numbers=(((1,), (1,)), ((), ())),
                         preferred_element_type=jnp.float32)          # (512, TB)
    # Bias add in f32, then cast to bf16 *before* ReLU so the big intermediate
    # spills to VMEM at half width and the max() runs packed.
    h1 = jnp.maximum((h1 + b1_ref[...]).astype(jnp.bfloat16), 0.0)    # (512, TB) bf16

    # Layer 2: Linear(512, 256) + ReLU (Dropout(0.2) is identity in eval).
    h2 = jnp.dot(w2_ref[...], h1, preferred_element_type=jnp.float32)  # (256, TB)
    h2 = jnp.maximum((h2 + b2_ref[...]).astype(jnp.bfloat16), 0.0)     # (256, TB) bf16

    # Layer 3: Linear(256, 64) + ReLU.
    h3 = jnp.dot(w3_ref[...], h2, preferred_element_type=jnp.float32)  # (64, TB)
    h3 = jnp.maximum(h3 + b3_ref[...], 0.0)                            # small; keep f32

    # Layer 4: Linear(64, 1) + Sigmoid — an N=1 matmul wastes the MXU, so do it as
    # a VPU multiply + sublane (XLU) reduction; result is lane-dense (1, TB).
    w4 = w4_ref[...].astype(jnp.float32)                               # (64, 1)
    logits = jnp.sum(h3 * w4, axis=0, keepdims=True) + b4_ref[...]     # (1, TB)
    o_ref[...] = jax.nn.sigmoid(logits).astype(o_ref.dtype)


def password_strength_forward(x, params, *, block_b=2048):
    """x: [B, input_size] float32.  params: dict from init_params (bf16 weights)."""
    assert block_b % 128 == 0 and block_b >= 128
    B, F = x.shape

    # Lane-aligned batch tile (multiple of 128), capped at block_b.  No padding:
    # the last grid block may be partial; Pallas masks its output store.
    tb = min(block_b, 128 * pl.cdiv(B, 128))
    n_tiles = pl.cdiv(B, tb)

    w1, b1 = params["w1"], params["b1"]
    w2, b2 = params["w2"], params["b2"]
    w3, b3 = params["w3"], params["b3"]
    w4t, b4 = params["w4"].T, params["b4"]                  # w4t: (64, 1)

    # Weights/biases: constant block index -> fetched once, VMEM-resident.
    const = lambda a: pl.BlockSpec(a.shape, lambda i: (0,) * a.ndim)

    out = pl.pallas_call(
        mlp_kernel,
        out_shape=jax.ShapeDtypeStruct((1, B), jnp.float32),
        grid=(n_tiles,),
        in_specs=[
            pl.BlockSpec((tb, F), lambda i: (i, 0)),        # streamed x tile, natural layout
            const(w1), const(b1),
            const(w2), const(b2),
            const(w3), const(b3),
            const(w4t), const(b4),
        ],
        out_specs=pl.BlockSpec((1, tb), lambda i: (0, i)),  # lane-dense output
        compiler_params=pltpu.CompilerParams(
            dimension_semantics=("parallel",),              # shard batch over TCs (v7x)
            vmem_limit_bytes=48 * 1024 * 1024,              # <= v7x's 64 MiB physical VMEM
        ),
    )(x, w1, b1, w2, b2, w3, b3, w4t, b4)

    return out.reshape(B, 1)


def init_params(key, input_size):
    """Deterministic synthetic parameters.

    Weights use the PyTorch nn.Linear layout (out_features, in_features) but are
    stored in bf16 (MXU-native); biases are f32 columns (out_features, 1).
    """
    dims = [(512, input_size), (256, 512), (64, 256), (1, 64)]
    keys = jax.random.split(key, 2 * len(dims))
    params = {}
    for i, (dout, din) in enumerate(dims, start=1):
        scale = 1.0 / jnp.sqrt(jnp.float32(din))
        w = jax.random.uniform(keys[2 * (i - 1)], (dout, din),
                               jnp.float32, -1.0, 1.0) * scale
        b = jax.random.uniform(keys[2 * (i - 1) + 1], (dout, 1),
                               jnp.float32, -1.0, 1.0) * scale
        params[f"w{i}"] = w.astype(jnp.bfloat16)
        params[f"b{i}"] = b
    return params


def reference_forward(x, params):
    """Pure-JAX reference mirroring the kernel's bf16-input / f32-accumulate math."""
    xb = x.astype(jnp.bfloat16)
    h1 = (jnp.dot(xb, params["w1"].T, preferred_element_type=jnp.float32)
          + params["b1"].T)
    h1 = jnp.maximum(h1.astype(jnp.bfloat16), 0.0)
    h2 = (jnp.dot(h1, params["w2"].T, preferred_element_type=jnp.float32)
          + params["b2"].T)
    h2 = jnp.maximum(h2.astype(jnp.bfloat16), 0.0)
    h3 = jnp.maximum(
        jnp.dot(h2, params["w3"].T, preferred_element_type=jnp.float32)
        + params["b3"].T, 0.0)
    logits = (jnp.sum(h3 * params["w4"].astype(jnp.float32), axis=-1, keepdims=True)
              + params["b4"].T)
    return jax.nn.sigmoid(logits)


if __name__ == "__main__":
    key = jax.random.PRNGKey(0)
    k_x, k_p = jax.random.split(key)

    batch = 8          # tiny demo batch (one partial 128-lane tile)
    input_size = 16    # password feature vector size

    x = jax.random.normal(k_x, (batch, input_size), dtype=jnp.float32)
    params = init_params(k_p, input_size)

    out = jax.block_until_ready(password_strength_forward(x, params))
    ref = reference_forward(x, params)

    assert out.shape == (batch, 1)
    assert bool(jnp.all(jnp.isfinite(out)))
    assert bool(jnp.allclose(out, ref, atol=5e-3, rtol=5e-3)), "mismatch vs reference"

    print("KERNEL_OK")
</pallas_src>

<mosaic_0001>
module attributes {stable_mosaic.version = 11 : i64} {
  func.func @mlp_kernel(%arg0: i32, %arg1: memref<128x16xf32, #tpu.memory_space<vmem>>, %arg2: memref<512x16xbf16, #tpu.memory_space<vmem>>, %arg3: memref<512x1xf32, #tpu.memory_space<vmem>>, %arg4: memref<256x512xbf16, #tpu.memory_space<vmem>>, %arg5: memref<256x1xf32, #tpu.memory_space<vmem>>, %arg6: memref<64x256xbf16, #tpu.memory_space<vmem>>, %arg7: memref<64x1xf32, #tpu.memory_space<vmem>>, %arg8: memref<64x1xbf16, #tpu.memory_space<vmem>>, %arg9: memref<1x1xf32, #tpu.memory_space<vmem>>, %arg10: memref<1x128xf32, #tpu.memory_space<vmem>>) attributes {dimension_semantics = [#tpu.dimension_semantics<parallel>], iteration_bounds = array<i64: 1>, scalar_prefetch = 0 : i64, scratch_operands = 0 : i64, tpu.core_type = #tpu.core_type<tc>, window_params = [{transform_indices = @transform_0, window_bounds = array<i64: 128, 16>}, {pipeline_mode = #tpu.pipeline_mode<synchronous>, transform_indices = @transform_1, window_bounds = array<i64: 512, 16>}, {pipeline_mode = #tpu.pipeline_mode<synchronous>, transform_indices = @transform_2, window_bounds = array<i64: 512, 1>}, {pipeline_mode = #tpu.pipeline_mode<synchronous>, transform_indices = @transform_3, window_bounds = array<i64: 256, 512>}, {pipeline_mode = #tpu.pipeline_mode<synchronous>, transform_indices = @transform_4, window_bounds = array<i64: 256, 1>}, {pipeline_mode = #tpu.pipeline_mode<synchronous>, transform_indices = @transform_5, window_bounds = array<i64: 64, 256>}, {pipeline_mode = #tpu.pipeline_mode<synchronous>, transform_indices = @transform_6, window_bounds = array<i64: 64, 1>}, {pipeline_mode = #tpu.pipeline_mode<synchronous>, transform_indices = @transform_7, window_bounds = array<i64: 64, 1>}, {pipeline_mode = #tpu.pipeline_mode<synchronous>, transform_indices = @transform_8, window_bounds = array<i64: 1, 1>}, {transform_indices = @transform_9, window_bounds = array<i64: 1, 128>}]} {
    %c0 = arith.constant 0 : index
    %c0_0 = arith.constant 0 : index
    %0 = vector.load %arg1[%c0, %c0_0] : memref<128x16xf32, #tpu.memory_space<vmem>>, vector<128x16xf32>
    %1 = arith.truncf %0 : vector<128x16xf32> to vector<128x16xbf16>
    %c0_1 = arith.constant 0 : index
    %c0_2 = arith.constant 0 : index
    %2 = vector.load %arg2[%c0_1, %c0_2] : memref<512x16xbf16, #tpu.memory_space<vmem>>, vector<512x16xbf16>
    %cst = arith.constant dense<0.000000e+00> : vector<512x128xf32>
    %3 = tpu.matmul %2, %1, %cst {dimension_numbers = #tpu.dot_dimension_numbers<[1], [1], [0], [0], [0, 0, 1, 0], [], []>} : vector<512x16xbf16>, vector<128x16xbf16>, vector<512x128xf32> -> vector<512x128xf32>
    %c0_3 = arith.constant 0 : index
    %c0_4 = arith.constant 0 : index
    %4 = vector.load %arg3[%c0_3, %c0_4] : memref<512x1xf32, #tpu.memory_space<vmem>>, vector<512x1xf32>
    %5 = vector.broadcast %4 : vector<512x1xf32> to vector<512x128xf32>
    %6 = arith.addf %3, %5 : vector<512x128xf32>
    %7 = arith.truncf %6 : vector<512x128xf32> to vector<512x128xbf16>
    %cst_5 = arith.constant 0.000000e+00 : bf16
    %8 = vector.broadcast %cst_5 : bf16 to vector<512x128xbf16>
    %9 = arith.maximumf %7, %8 : vector<512x128xbf16>
    %c0_6 = arith.constant 0 : index
    %c0_7 = arith.constant 0 : index
    %10 = vector.load %arg4[%c0_6, %c0_7] : memref<256x512xbf16, #tpu.memory_space<vmem>>, vector<256x512xbf16>
    %cst_8 = arith.constant dense<0.000000e+00> : vector<256x128xf32>
    %11 = tpu.matmul %10, %9, %cst_8 {dimension_numbers = #tpu.dot_dimension_numbers<[1], [0], [0], [1], [0, 0, 1, 1], [], []>} : vector<256x512xbf16>, vector<512x128xbf16>, vector<256x128xf32> -> vector<256x128xf32>
    %c0_9 = arith.constant 0 : index
    %c0_10 = arith.constant 0 : index
    %12 = vector.load %arg5[%c0_9, %c0_10] : memref<256x1xf32, #tpu.memory_space<vmem>>, vector<256x1xf32>
    %13 = vector.broadcast %12 : vector<256x1xf32> to vector<256x128xf32>
    %14 = arith.addf %11, %13 : vector<256x128xf32>
    %15 = arith.truncf %14 : vector<256x128xf32> to vector<256x128xbf16>
    %cst_11 = arith.constant 0.000000e+00 : bf16
    %16 = vector.broadcast %cst_11 : bf16 to vector<256x128xbf16>
    %17 = arith.maximumf %15, %16 : vector<256x128xbf16>
    %c0_12 = arith.constant 0 : index
    %c0_13 = arith.constant 0 : index
    %18 = vector.load %arg6[%c0_12, %c0_13] : memref<64x256xbf16, #tpu.memory_space<vmem>>, vector<64x256xbf16>
    %cst_14 = arith.constant dense<0.000000e+00> : vector<64x128xf32>
    %19 = tpu.matmul %18, %17, %cst_14 {dimension_numbers = #tpu.dot_dimension_numbers<[1], [0], [0], [1], [0, 0, 1, 1], [], []>} : vector<64x256xbf16>, vector<256x128xbf16>, vector<64x128xf32> -> vector<64x128xf32>
    %c0_15 = arith.constant 0 : index
    %c0_16 = arith.constant 0 : index
    %20 = vector.load %arg7[%c0_15, %c0_16] : memref<64x1xf32, #tpu.memory_space<vmem>>, vector<64x1xf32>
    %21 = vector.broadcast %20 : vector<64x1xf32> to vector<64x128xf32>
    %22 = arith.addf %19, %21 : vector<64x128xf32>
    %cst_17 = arith.constant 0.000000e+00 : f32
    %23 = vector.broadcast %cst_17 : f32 to vector<64x128xf32>
    %24 = arith.maximumf %22, %23 : vector<64x128xf32>
    %c0_18 = arith.constant 0 : index
    %c0_19 = arith.constant 0 : index
    %25 = vector.load %arg8[%c0_18, %c0_19] : memref<64x1xbf16, #tpu.memory_space<vmem>>, vector<64x1xbf16>
    %26 = arith.extf %25 : vector<64x1xbf16> to vector<64x1xf32>
    %27 = vector.broadcast %26 : vector<64x1xf32> to vector<64x128xf32>
    %28 = arith.mulf %24, %27 : vector<64x128xf32>
    %cst_20 = arith.constant dense<0.000000e+00> : vector<128xf32>
    %29 = vector.multi_reduction <add>, %28, %cst_20 [0] : vector<64x128xf32> to vector<128xf32>
    %30 = vector.shape_cast %29 : vector<128xf32> to vector<1x128xf32>
    %c0_21 = arith.constant 0 : index
    %c0_22 = arith.constant 0 : index
    %31 = vector.load %arg9[%c0_21, %c0_22] : memref<1x1xf32, #tpu.memory_space<vmem>>, vector<1x1xf32>
    %32 = vector.broadcast %31 : vector<1x1xf32> to vector<1x128xf32>
    %33 = arith.addf %30, %32 : vector<1x128xf32>
    %34 = arith.negf %33 : vector<1x128xf32>
    %35 = math.exp %34 : vector<1x128xf32>
    %cst_23 = arith.constant 1.000000e+00 : f32
    %36 = vector.broadcast %cst_23 : f32 to vector<1x128xf32>
    %37 = arith.addf %36, %35 : vector<1x128xf32>
    %38 = arith.divf %36, %37 : vector<1x128xf32>
    %c0_24 = arith.constant 0 : index
    %c0_25 = arith.constant 0 : index
    %39 = vector.load %arg10[%c0_24, %c0_25] : memref<1x128xf32, #tpu.memory_space<vmem>>, vector<1x128xf32>
    tpu.vector_store %arg10[%c0_24, %c0_25], %38 {strides = array<i32>} : memref<1x128xf32, #tpu.memory_space<vmem>>, vector<1x128xf32>,
    return
  }
  func.func @transform_0(%arg0: i32) -> (i32, i32) {
    %c0_i32 = arith.constant 0 : i32
    %c0_i32_0 = arith.constant 0 : i32
    return %arg0, %c0_i32 : i32, i32
  }
  func.func @transform_1(%arg0: i32) -> (i32, i32) {
    %c0_i32 = arith.constant 0 : i32
    %c0_i32_0 = arith.constant 0 : i32
    %c0_i32_1 = arith.constant 0 : i32
    return %c0_i32, %c0_i32_0 : i32, i32
  }
  func.func @transform_2(%arg0: i32) -> (i32, i32) {
    %c0_i32 = arith.constant 0 : i32
    %c0_i32_0 = arith.constant 0 : i32
    %c0_i32_1 = arith.constant 0 : i32
    return %c0_i32, %c0_i32_0 : i32, i32
  }
  func.func @transform_3(%arg0: i32) -> (i32, i32) {
    %c0_i32 = arith.constant 0 : i32
    %c0_i32_0 = arith.constant 0 : i32
    %c0_i32_1 = arith.constant 0 : i32
    return %c0_i32, %c0_i32_0 : i32, i32
  }
  func.func @transform_4(%arg0: i32) -> (i32, i32) {
    %c0_i32 = arith.constant 0 : i32
    %c0_i32_0 = arith.constant 0 : i32
    %c0_i32_1 = arith.constant 0 : i32
    return %c0_i32, %c0_i32_0 : i32, i32
  }
  func.func @transform_5(%arg0: i32) -> (i32, i32) {
    %c0_i32 = arith.constant 0 : i32
    %c0_i32_0 = arith.constant 0 : i32
    %c0_i32_1 = arith.constant 0 : i32
    return %c0_i32, %c0_i32_0 : i32, i32
  }
  func.func @transform_6(%arg0: i32) -> (i32, i32) {
    %c0_i32 = arith.constant 0 : i32
    %c0_i32_0 = arith.constant 0 : i32
    %c0_i32_1 = arith.constant 0 : i32
    return %c0_i32, %c0_i32_0 : i32, i32
  }
  func.func @transform_7(%arg0: i32) -> (i32, i32) {
    %c0_i32 = arith.constant 0 : i32
    %c0_i32_0 = arith.constant 0 : i32
    %c0_i32_1 = arith.constant 0 : i32
    return %c0_i32, %c0_i32_0 : i32, i32
  }
  func.func @transform_8(%arg0: i32) -> (i32, i32) {
    %c0_i32 = arith.constant 0 : i32
    %c0_i32_0 = arith.constant 0 : i32
    %c0_i32_1 = arith.constant 0 : i32
    return %c0_i32, %c0_i32_0 : i32, i32
  }
  func.func @transform_9(%arg0: i32) -> (i32, i32) {
    %c0_i32 = arith.constant 0 : i32
    %c0_i32_0 = arith.constant 0 : i32
    return %c0_i32, %arg0 : i32, i32
  }
}

</mosaic_0001>

<bundles_post_ra>
// kernel: tpu_custom_call.1
= control target key start
LH: loop header
LB: loop body
LE: loop exit
PB: predicated region body
PF: predicated region fallthrough
CT: control target
= control target key end

     0   :  { %s4486_s0 = inlined_call_operand.vmem [shape: f32[8,16], index: 0, kind: input, shape index: {}]   ;;  %s4487_s1 = inlined_call_operand.vmem [shape: bf16[512,16], index: 1, kind: input, shape index: {}]   ;;  %s4488_s2 = inlined_call_operand.vmem [shape: f32[512,1], index: 2, kind: input, shape index: {}]   ;;  %s4489_s3 = inlined_call_operand.vmem [shape: bf16[256,512], index: 3, kind: input, shape index: {}]   ;;  %s4490_s4 = inlined_call_operand.vmem [shape: f32[256,1], index: 4, kind: input, shape index: {}]   ;;  %s4491_s5 = inlined_call_operand.vmem [shape: bf16[64,256], index: 5, kind: input, shape index: {}]   ;;  %s4492_s6 = inlined_call_operand.vmem [shape: f32[64,1], index: 6, kind: input, shape index: {}]   ;;  %s4493_s7 = inlined_call_operand.vmem [shape: bf16[64,1], index: 7, kind: input, shape index: {}]   ;;  %s4494_s8 = inlined_call_operand.<no memory space> [shape: f32[1,1], index: 8, kind: input, shape index: {}]   ;;  %s4495_s9 = inlined_call_operand.hbm [shape: f32[1,8], index: 9, kind: output, shape index: {}]  }
   0x1   :  { %v14_v0 = vstv %s4494_s8 }
   0x2   :  { %15 = vst [vmem:[#allocation2] sm:$0x1] %v14_v0 }
   0x3   :  { %v154_v1 = vld [vmem:[%s4488_s2 + $0xf0] sm:$0xff]  ;;  %v4496_v4 = vmov 0   ;;  %v51_v5 = vld [vmem:[%s4486_s0 + $0x78] sm:$0xff]  ;;  %vm668_vm0 = vcmask 130048   ;;  %v48_v7 = vld [vmem:[%s4486_s0 + $0x60] sm:$0xff] }
   0x4   :  { %v138_v2 = vld [vmem:[%s4488_s2 + $0x70] sm:$0xff]  ;;  %2917 = vset.pattern.permute.xlu1 %v4496_v4  ;;  %2916 = vset.pattern.permute.xlu0 %v4496_v4  ;;  %v155_v8 = vld [vmem:[%s4488_s2 + $0xf8] sm:$0xff]  ;;  %v49_v10 = vld [vmem:[%s4486_s0 + $0x68] sm:$0xff] }
   0x5   :  { %v50_v3 = vld [vmem:[%s4486_s0 + $0x70] sm:$0xff]  ;;  %340 = vperm.xlu0 %2916, %v154_v1   ;;  %260 = vperm.xlu1 %2917, %v138_v2   ;;  %v139_v9 = vld [vmem:[%s4488_s2 + $0x78] sm:$0xff]  ;;  %v58_v12 = vpack.c.bf16 %v49_v10, %v48_v7  ;;  %v152_v13 = vld [vmem:[%s4488_s2 + $0xe0] sm:$0xff] }
   0x6   :  { %v59_v6 = vpack.c.bf16 %v51_v5, %v50_v3  ;;  %v153_v14 = vld [vmem:[%s4488_s2 + $0xe8] sm:$0xff]  ;;  %v46_v15 = vld [vmem:[%s4486_s0 + $0x50] sm:$0xff]  ;;  %v47_v16 = vld [vmem:[%s4486_s0 + $0x58] sm:$0xff] }
   0x7   :  { %v784_v17 = vsel %vm668_vm0, %v58_v12, 0  ;;  %v137_v18 = vld [vmem:[%s4488_s2 + $0x68] sm:$0xff]  ;;  %v136_v19 = vld [vmem:[%s4488_s2 + $0x60] sm:$0xff]  ;;  %v57_v20 = vpack.c.bf16 %v47_v16, %v46_v15  ;;  %v151_v21 = vld [vmem:[%s4488_s2 + $0xd8] sm:$0xff] }
   0x8   :  { %2906 = vmatprep.subr.msk.bf16.mxu0 %vm668_vm0, %v59_v6  ;;  %v787_v11 = vsel %vm668_vm0, %v59_v6, 0  ;;  %v150_v22 = vld [vmem:[%s4488_s2 + $0xd0] sm:$0xff]  ;;  %v44_v23 = vld [vmem:[%s4486_s0 + $0x40] sm:$0xff]  ;;  %v45_v24 = vld [vmem:[%s4486_s0 + $0x48] sm:$0xff] }
   0x9   :  { %2811 = vmatpush3.bf16.xpose.msra.mxu0 %v787_v11  ;;  %345 = vperm.xlu0 %2916, %v155_v8   ;;  %v2928_v25 = vld [vmem:[%s4487_s1] sm:$0xff]   ;;  %v781_v26 = vsel %vm668_vm0, %v57_v20, 0  ;;  %v135_v27 = vld [vmem:[%s4488_s2 + $0x58] sm:$0xff]  ;;  %v134_v28 = vld [vmem:[%s4488_s2 + $0x50] sm:$0xff]  ;;  %v56_v29 = vpack.c.bf16 %v45_v24, %v44_v23 }
   0xa   :  { %265 = vperm.xlu1 %2917, %v139_v9   ;;  %2907 = vmatprep.subr.msk.bf16.mxu0 %vm668_vm0, %v58_v12  ;;  %v149_v30 = vld [vmem:[%s4488_s2 + $0xc8] sm:$0xff]  ;;  %v148_v31 = vld [vmem:[%s4488_s2 + $0xc0] sm:$0xff]  ;;  %v42_v32 = vld [vmem:[%s4486_s0 + $0x30] sm:$0xff] }
   0xb   :  { %2826 = vmatprep.mubr.msk.bf16.mxu0 %vm668_vm0, %v2928_v25  ;;  %v43_v33 = vld [vmem:[%s4486_s0 + $0x38] sm:$0xff]  ;;  %v778_v34 = vsel %vm668_vm0, %v56_v29, 0  ;;  %v133_v35 = vld [vmem:[%s4488_s2 + $0x48] sm:$0xff]  ;;  %v132_v36 = vld [vmem:[%s4488_s2 + $0x40] sm:$0xff] }
   0xc   :  { %v55_v37 = vpack.c.bf16 %v43_v33, %v42_v32  ;;  %v147_v38 = vld [vmem:[%s4488_s2 + $0xb8] sm:$0xff]  ;;  %v146_v39 = vld [vmem:[%s4488_s2 + $0xb0] sm:$0xff]  ;;  %v40_v40 = vld [vmem:[%s4486_s0 + $0x20] sm:$0xff] }
   0xd   :  { %330 = vperm.xlu0 %2916, %v152_v13   ;;  %v41_v41 = vld [vmem:[%s4486_s0 + $0x28] sm:$0xff]  ;;  %v131_v43 = vld [vmem:[%s4488_s2 + $0x38] sm:$0xff]  ;;  %v130_v44 = vld [vmem:[%s4488_s2 + $0x30] sm:$0xff] }
   0xe   :  { %335 = vperm.xlu1 %2917, %v153_v14   ;;  %v775_v42 = vsel %vm668_vm0, %v55_v37, 0  ;;  %v54_v45 = vpack.c.bf16 %v41_v41, %v40_v40  ;;  %v145_v46 = vld [vmem:[%s4488_s2 + $0xa8] sm:$0xff]  ;;  %v144_v47 = vld [vmem:[%s4488_s2 + $0xa0] sm:$0xff]  ;;  %v38_v48 = vld [vmem:[%s4486_s0 + $0x10] sm:$0xff] }
   0xf   :  { %v39_v49 = vld [vmem:[%s4486_s0 + $0x18] sm:$0xff]  ;;  %v129_v51 = vld [vmem:[%s4488_s2 + $0x28] sm:$0xff]  ;;  %v128_v52 = vld [vmem:[%s4488_s2 + $0x20] sm:$0xff] }
  0x10   :  { %v772_v50 = vsel %vm668_vm0, %v54_v45, 0  ;;  %v53_v53 = vpack.c.bf16 %v39_v49, %v38_v48  ;;  %v143_v54 = vld [vmem:[%s4488_s2 + $0x98] sm:$0xff]  ;;  %v142_v55 = vld [vmem:[%s4488_s2 + $0x90] sm:$0xff]  ;;  %v36_v56 = vld [vmem:[%s4486_s0] sm:$0xff] }
  0x11   :  { %2813 = vmatpush3.bf16.xpose.msra.mxu0 %v784_v17  ;;  %250 = vperm.xlu0 %2916, %v136_v19   ;;  %v37_v57 = vld [vmem:[%s4486_s0 + $0x8] sm:$0xff]  ;;  %v127_v59 = vld [vmem:[%s4488_s2 + $0x18] sm:$0xff]  ;;  %v126_v60 = vld [vmem:[%s4488_s2 + $0x10] sm:$0xff] }
  0x12   :  { %255 = vperm.xlu1 %2917, %v137_v18   ;;  %2908 = vmatprep.subr.msk.bf16.mxu0 %vm668_vm0, %v57_v20  ;;  %v769_v58 = vsel %vm668_vm0, %v53_v53, 0  ;;  %v52_v61 = vpack.c.bf16 %v37_v57, %v36_v56  ;;  %v141_v62 = vld [vmem:[%s4488_s2 + $0x88] sm:$0xff]  ;;  %v140_v63 = vld [vmem:[%s4488_s2 + $0x80] sm:$0xff]  ;;  %v187_v3 = vld [vmem:[%s4488_s2 + $0x1f8] sm:$0xff] }
  0x13   :  { %v125_v1 = vld [vmem:[%s4488_s2 + $0x8] sm:$0xff]  ;;  %v124_v2 = vld [vmem:[%s4488_s2] sm:$0xff]  ;;  %v186_v5 = vld [vmem:[%s4488_s2 + $0x1f0] sm:$0xff] }
  0x14   :  { %v766_v0 = vsel %vm668_vm0, %v52_v61, 0  ;;  %v2929_v6 = vld [vmem:[%s4487_s1 + $0x8] sm:$0xff]   ;;  %v2930_v7 = vld [vmem:[%s4487_s1 + $0x10] sm:$0xff]   ;;  %v171_v8 = vld [vmem:[%s4488_s2 + $0x178] sm:$0xff] }
  0x15   :  { %320 = vperm.xlu0 %2916, %v150_v22   ;;  %v170_v9 = vld [vmem:[%s4488_s2 + $0x170] sm:$0xff]  ;;  %v185_v10 = vld [vmem:[%s4488_s2 + $0x1e8] sm:$0xff]  ;;  %v184_v11 = vld [vmem:[%s4488_s2 + $0x1e0] sm:$0xff] }
  0x16   :  { %325 = vperm.xlu1 %2917, %v151_v21   ;;  %v2931_v12 = vld [vmem:[%s4487_s1 + $0x18] sm:$0xff]   ;;  %v169_v13 = vld [vmem:[%s4488_s2 + $0x168] sm:$0xff]  ;;  %v2932_v14 = vld [vmem:[%s4487_s1 + $0x20] sm:$0xff]  }
  0x17   :  { %v168_v15 = vld [vmem:[%s4488_s2 + $0x160] sm:$0xff]  ;;  %v183_v16 = vld [vmem:[%s4488_s2 + $0x1d8] sm:$0xff]  ;;  %v182_v17 = vld [vmem:[%s4488_s2 + $0x1d0] sm:$0xff] }
  0x18   :  { %v2933_v18 = vld [vmem:[%s4487_s1 + $0x28] sm:$0xff]   ;;  %v2934_v19 = vld [vmem:[%s4487_s1 + $0x30] sm:$0xff]   ;;  %v167_v20 = vld [vmem:[%s4488_s2 + $0x158] sm:$0xff] }
  0x19   :  { %2815 = vmatpush3.bf16.xpose.msra.mxu0 %v781_v26  ;;  %240 = vperm.xlu0 %2916, %v134_v28   ;;  %v166_v21 = vld [vmem:[%s4488_s2 + $0x150] sm:$0xff]  ;;  %v181_v22 = vld [vmem:[%s4488_s2 + $0x1c8] sm:$0xff]  ;;  %v180_v23 = vld [vmem:[%s4488_s2 + $0x1c0] sm:$0xff] }
  0x1a   :  { %245 = vperm.xlu1 %2917, %v135_v27   ;;  %2909 = vmatprep.subr.msk.bf16.mxu0 %vm668_vm0, %v56_v29  ;;  %v2935_v24 = vld [vmem:[%s4487_s1 + $0x38] sm:$0xff]   ;;  %v2936_v25 = vld [vmem:[%s4487_s1 + $0x40] sm:$0xff]   ;;  %v165_v26 = vld [vmem:[%s4488_s2 + $0x148] sm:$0xff] }
  0x1b   :  { %v164_v27 = vld [vmem:[%s4488_s2 + $0x140] sm:$0xff]  ;;  %v179_v28 = vld [vmem:[%s4488_s2 + $0x1b8] sm:$0xff]  ;;  %v178_v29 = vld [vmem:[%s4488_s2 + $0x1b0] sm:$0xff] }
  0x1d   :  { %310 = vperm.xlu0 %2916, %v148_v31   ;;  %v2938_v31 = vld [vmem:[%s4487_s1 + $0x50] sm:$0xff]  }
  0x1e   :  { %315 = vperm.xlu1 %2917, %v149_v30   ;;  %v2937_v30 = vld [vmem:[%s4487_s1 + $0x48] sm:$0xff]  }
  0x21   :  { %2817 = vmatpush3.bf16.xpose.msra.mxu0 %v778_v34  ;;  %230 = vperm.xlu0 %2916, %v132_v36  }
  0x22   :  { %235 = vperm.xlu1 %2917, %v133_v35   ;;  %2910 = vmatprep.subr.msk.bf16.mxu0 %vm668_vm0, %v55_v37 }
  0x25   :  { %300 = vperm.xlu0 %2916, %v146_v39  }
  0x26   :  { %305 = vperm.xlu1 %2917, %v147_v38  }
  0x29   :  { %2819 = vmatpush3.bf16.xpose.msra.mxu0 %v775_v42  ;;  %220 = vperm.xlu0 %2916, %v130_v44  }
  0x2a   :  { %225 = vperm.xlu1 %2917, %v131_v43   ;;  %2911 = vmatprep.subr.msk.bf16.mxu0 %vm668_vm0, %v54_v45 }
  0x2d   :  { %290 = vperm.xlu0 %2916, %v144_v47  }
  0x2e   :  { %295 = vperm.xlu1 %2917, %v145_v46  }
  0x31   :  { %2821 = vmatpush3.bf16.xpose.msra.mxu0 %v772_v50  ;;  %210 = vperm.xlu0 %2916, %v128_v52  }
  0x32   :  { %215 = vperm.xlu1 %2917, %v129_v51   ;;  %2912 = vmatprep.subr.msk.bf16.mxu0 %vm668_vm0, %v53_v53 }
  0x35   :  { %280 = vperm.xlu0 %2916, %v142_v55  }
  0x36   :  { %285 = vperm.xlu1 %2917, %v143_v54  }
  0x39   :  { %2823 = vmatpush3.bf16.xpose.msra.mxu0 %v769_v58  ;;  %200 = vperm.xlu0 %2916, %v126_v60  }
  0x3a   :  { %205 = vperm.xlu1 %2917, %v127_v59   ;;  %2913 = vmatprep.subr.msk.bf16.mxu0 %vm668_vm0, %v52_v61 }
  0x3d   :  { %270 = vperm.xlu0 %2916, %v140_v63  }
  0x3e   :  { %275 = vperm.xlu1 %2917, %v141_v62  }
  0x41   :  { %2825 = vmatpush3.bf16.xpose.msra.mxu0 %v766_v0  ;;  %190 = vperm.xlu0 %2916, %v124_v2  }
  0x42   :  { %195 = vperm.xlu1 %2917, %v125_v1  }
  0x45   :  { %500 = vperm.xlu0 %2916, %v186_v5  }
  0x46   :  { %505 = vperm.xlu1 %2917, %v187_v3  }
  0x48   :  { %2827 = vmatmul.mubr.msk.bf16.vlgmr.msra.gmra.mxu0 %vm668_vm0, %v2929_v6 }
  0x49   :  { %2830 = vmatprep.mubr.msk.bf16.mxu0 %vm668_vm0, %v2930_v7  ;;  %420 = vperm.xlu0 %2916, %v170_v9  }
  0x4a   :  { %425 = vperm.xlu1 %2917, %v171_v8  }
  0x4d   :  { %490 = vperm.xlu0 %2916, %v184_v11  }
  0x4e   :  { %495 = vperm.xlu1 %2917, %v185_v10  }
  0x50   :  { %2831 = vmatmul.mubr.msk.bf16.gmra.mxu0 %vm668_vm0, %v2931_v12 }
  0x51   :  { %2834 = vmatprep.mubr.msk.bf16.mxu0 %vm668_vm0, %v2932_v14  ;;  %410 = vperm.xlu0 %2916, %v168_v15  }
  0x52   :  { %415 = vperm.xlu1 %2917, %v169_v13  }
  0x55   :  { %480 = vperm.xlu0 %2916, %v182_v17  }
  0x56   :  { %485 = vperm.xlu1 %2917, %v183_v16  }
  0x58   :  { %2835 = vmatmul.mubr.msk.bf16.gmra.mxu0 %vm668_vm0, %v2933_v18 }
  0x59   :  { %2838 = vmatprep.mubr.msk.bf16.mxu0 %vm668_vm0, %v2934_v19  ;;  %400 = vperm.xlu0 %2916, %v166_v21  }
  0x5a   :  { %405 = vperm.xlu1 %2917, %v167_v20  }
  0x5d   :  { %470 = vperm.xlu0 %2916, %v180_v23  }
  0x5e   :  { %475 = vperm.xlu1 %2917, %v181_v22  }
  0x60   :  { %2839 = vmatmul.mubr.msk.bf16.gmra.mxu0 %vm668_vm0, %v2935_v24 }
  0x61   :  { %2842 = vmatprep.mubr.msk.bf16.mxu0 %vm668_vm0, %v2936_v25  ;;  %390 = vperm.xlu0 %2916, %v164_v27  }
  0x62   :  { %395 = vperm.xlu1 %2917, %v165_v26  }
  0x63   :  { %16 = vsyncpa [#allocation4], 0  ;;  %v163_v32 = vld [vmem:[%s4488_s2 + $0x138] sm:$0xff]  ;;  %v162_v33 = vld [vmem:[%s4488_s2 + $0x130] sm:$0xff] }
  0x64   :  { %v177_v34 = vld [vmem:[%s4488_s2 + $0x1a8] sm:$0xff]  ;;  %v176_v35 = vld [vmem:[%s4488_s2 + $0x1a0] sm:$0xff]  ;;  %v2939_v36 = vld [vmem:[%s4487_s1 + $0x58] sm:$0xff]  }
  0x65   :  { %460 = vperm.xlu0 %2916, %v178_v29   ;;  %v2940_v37 = vld [vmem:[%s4487_s1 + $0x60] sm:$0xff]   ;;  %v161_v38 = vld [vmem:[%s4488_s2 + $0x128] sm:$0xff]  ;;  %v175_v40 = vld [vmem:[%s4488_s2 + $0x198] sm:$0xff] }
  0x66   :  { %465 = vperm.xlu1 %2917, %v179_v28   ;;  %v160_v39 = vld [vmem:[%s4488_s2 + $0x120] sm:$0xff]  ;;  %v174_v41 = vld [vmem:[%s4488_s2 + $0x190] sm:$0xff]  ;;  %v2941_v42 = vld [vmem:[%s4487_s1 + $0x68] sm:$0xff]  }
  0x67   :  { %v2942_v43 = vld [vmem:[%s4487_s1 + $0x70] sm:$0xff]   ;;  %v159_v44 = vld [vmem:[%s4488_s2 + $0x118] sm:$0xff]  ;;  %v173_v46 = vld [vmem:[%s4488_s2 + $0x188] sm:$0xff] }
  0x68   :  { %2843 = vmatmul.mubr.msk.bf16.gmra.mxu0 %vm668_vm0, %v2937_v30  ;;  %v158_v45 = vld [vmem:[%s4488_s2 + $0x110] sm:$0xff]  ;;  %v172_v47 = vld [vmem:[%s4488_s2 + $0x180] sm:$0xff]  ;;  %v2943_v48 = vld [vmem:[%s4487_s1 + $0x78] sm:$0xff]  }
  0x69   :  { %2846 = vmatprep.mubr.msk.bf16.mxu0 %vm668_vm0, %v2938_v31  ;;  %380 = vperm.xlu0 %2916, %v162_v33   ;;  %v2944_v49 = vld [vmem:[%s4487_s1 + $0x80] sm:$0xff]   ;;  %v157_v50 = vld [vmem:[%s4488_s2 + $0x108] sm:$0xff]  ;;  %v1237_v52 = vld [vmem:[%s4490_s4 + $0xf8] sm:$0xff] }
  0x6a   :  { %385 = vperm.xlu1 %2917, %v163_v32   ;;  %v156_v51 = vld [vmem:[%s4488_s2 + $0x100] sm:$0xff]  ;;  %v1236_v53 = vld [vmem:[%s4490_s4 + $0xf0] sm:$0xff]  ;;  %v2945_v54 = vld [vmem:[%s4487_s1 + $0x88] sm:$0xff]  }
  0x6b   :  { %v2946_v55 = vld [vmem:[%s4487_s1 + $0x90] sm:$0xff]   ;;  %v1221_v56 = vld [vmem:[%s4490_s4 + $0x78] sm:$0xff]  ;;  %v1235_v58 = vld [vmem:[%s4490_s4 + $0xe8] sm:$0xff] }
  0x6c   :  { %v1220_v57 = vld [vmem:[%s4490_s4 + $0x70] sm:$0xff]  ;;  %v1234_v59 = vld [vmem:[%s4490_s4 + $0xe0] sm:$0xff]  ;;  %v2947_v60 = vld [vmem:[%s4487_s1 + $0x98] sm:$0xff]  }
  0x6d   :  { %450 = vperm.xlu0 %2916, %v176_v35   ;;  %v2948_v61 = vld [vmem:[%s4487_s1 + $0xa0] sm:$0xff]   ;;  %v1219_v62 = vld [vmem:[%s4490_s4 + $0x68] sm:$0xff]  ;;  %v1233_v1 = vld [vmem:[%s4490_s4 + $0xd8] sm:$0xff] }
  0x6e   :  { %455 = vperm.xlu1 %2917, %v177_v34   ;;  %v1218_v63 = vld [vmem:[%s4490_s4 + $0x60] sm:$0xff]  ;;  %v1232_v2 = vld [vmem:[%s4490_s4 + $0xd0] sm:$0xff]  ;;  %v2949_v5 = vld [vmem:[%s4487_s1 + $0xa8] sm:$0xff]  }
  0x6f   :  { %v2950_v6 = vld [vmem:[%s4487_s1 + $0xb0] sm:$0xff]   ;;  %v1217_v7 = vld [vmem:[%s4490_s4 + $0x58] sm:$0xff]  ;;  %v1231_v11 = vld [vmem:[%s4490_s4 + $0xc8] sm:$0xff] }
  0x70   :  { %2847 = vmatmul.mubr.msk.bf16.gmra.mxu0 %vm668_vm0, %v2939_v36  ;;  %v1216_v8 = vld [vmem:[%s4490_s4 + $0x50] sm:$0xff]  ;;  %v1230_v12 = vld [vmem:[%s4490_s4 + $0xc0] sm:$0xff]  ;;  %v2951_v13 = vld [vmem:[%s4487_s1 + $0xb8] sm:$0xff]  }
  0x71   :  { %2850 = vmatprep.mubr.msk.bf16.mxu0 %vm668_vm0, %v2940_v37  ;;  %370 = vperm.xlu0 %2916, %v160_v39   ;;  %v2952_v14 = vld [vmem:[%s4487_s1 + $0xc0] sm:$0xff]   ;;  %v1215_v16 = vld [vmem:[%s4490_s4 + $0x48] sm:$0xff]  ;;  %v1229_v19 = vld [vmem:[%s4490_s4 + $0xb8] sm:$0xff] }
  0x72   :  { %375 = vperm.xlu1 %2917, %v161_v38   ;;  %v1214_v17 = vld [vmem:[%s4490_s4 + $0x40] sm:$0xff]  ;;  %v1228_v20 = vld [vmem:[%s4490_s4 + $0xb0] sm:$0xff]  ;;  %v2953_v21 = vld [vmem:[%s4487_s1 + $0xc8] sm:$0xff]  }
  0x73   :  { %v2954_v23 = vld [vmem:[%s4487_s1 + $0xd0] sm:$0xff]   ;;  %v1213_v25 = vld [vmem:[%s4490_s4 + $0x38] sm:$0xff]  ;;  %v1227_v28 = vld [vmem:[%s4490_s4 + $0xa8] sm:$0xff] }
  0x74   :  { %v1212_v26 = vld [vmem:[%s4490_s4 + $0x30] sm:$0xff]  ;;  %v1226_v29 = vld [vmem:[%s4490_s4 + $0xa0] sm:$0xff]  ;;  %v2955_v31 = vld [vmem:[%s4487_s1 + $0xd8] sm:$0xff]  }
  0x75   :  { %440 = vperm.xlu0 %2916, %v174_v41   ;;  %v2956_v32 = vld [vmem:[%s4487_s1 + $0xe0] sm:$0xff]   ;;  %v1211_v33 = vld [vmem:[%s4490_s4 + $0x28] sm:$0xff]  ;;  %v1225_v37 = vld [vmem:[%s4490_s4 + $0x98] sm:$0xff] }
  0x76   :  { %445 = vperm.xlu1 %2917, %v175_v40   ;;  %v1210_v34 = vld [vmem:[%s4490_s4 + $0x20] sm:$0xff]  ;;  %v1224_v38 = vld [vmem:[%s4490_s4 + $0x90] sm:$0xff]  ;;  %v2957_v39 = vld [vmem:[%s4487_s1 + $0xe8] sm:$0xff]  }
  0x77   :  { %v2958_v40 = vld [vmem:[%s4487_s1 + $0xf0] sm:$0xff]  }
  0x78   :  { %2851 = vmatmul.mubr.msk.bf16.gmra.mxu0 %vm668_vm0, %v2941_v42  ;;  %v1209_v42 = vld [vmem:[%s4490_s4 + $0x18] sm:$0xff] }
  0x79   :  { %2854 = vmatprep.mubr.msk.bf16.mxu0 %vm668_vm0, %v2942_v43  ;;  %360 = vperm.xlu0 %2916, %v158_v45   ;;  %v1208_v43 = vld [vmem:[%s4490_s4 + $0x10] sm:$0xff]  ;;  %v1223_v45 = vld [vmem:[%s4490_s4 + $0x88] sm:$0xff] }
  0x7a   :  { %365 = vperm.xlu1 %2917, %v159_v44  }
  0x7d   :  { %430 = vperm.xlu0 %2916, %v172_v47   ;;  %v2959_v47 = vld [vmem:[%s4487_s1 + $0xf8] sm:$0xff]  }
  0x7e   :  { %435 = vperm.xlu1 %2917, %v173_v46   ;;  %v1222_v46 = vld [vmem:[%s4490_s4 + $0x80] sm:$0xff] }
  0x80   :  { %2855 = vmatmul.mubr.msk.bf16.gmra.mxu0 %vm668_vm0, %v2943_v48  ;;  %v3515_v0 = vpop.permute.xlu1 %260  ;;  %v3523_v3 = vpop.permute.xlu0 %340 }
  0x81   :  { %2858 = vmatprep.mubr.msk.bf16.mxu0 %vm668_vm0, %v2944_v49  ;;  %350 = vperm.xlu0 %2916, %v156_v51   ;;  %v1206_v51 = vld [vmem:[%s4490_s4] sm:$0xff] }
  0x82   :  { %355 = vperm.xlu1 %2917, %v157_v50   ;;  %v1207_v50 = vld [vmem:[%s4490_s4 + $0x8] sm:$0xff] }
  0x84   :  { %v3541_v10 = vpop.permute.xlu0 %345 }
  0x85   :  { %1390 = vperm.xlu0 %2916, %v1236_v53   ;;  %v3538_v9 = vpop.permute.xlu1 %265  ;;  %v2081_v53 = vld [vmem:[%s4492_s6 + $0x8] sm:$0xff] }
  0x86   :  { %1395 = vperm.xlu1 %2917, %v1237_v52  }
  0x88   :  { %2859 = vmatmul.mubr.msk.bf16.gmra.mxu0 %vm668_vm0, %v2945_v54  ;;  %v3563_v18 = vpop.permute.xlu0 %330  ;;  %v2080_v54 = vld [vmem:[%s4492_s6] sm:$0xff] }
  0x89   :  { %2862 = vmatprep.mubr.msk.bf16.mxu0 %vm668_vm0, %v2946_v55  ;;  %1310 = vperm.xlu0 %2916, %v1220_v57   ;;  %v3555_v15 = vpop.permute.xlu1 %335  ;;  %v2488_v55 = vld [vmem:[%s4493_s7] sm:$0xff]  }
  0x8a   :  { %1315 = vperm.xlu1 %2917, %v1221_v56   ;;  %v2489_v57 = vunpack.c.l.bf16 %v2488_v55 }
  0x8c   :  { %v3581_v24 = vpop.permute.xlu0 %250 }
  0x8d   :  { %1380 = vperm.xlu0 %2916, %v1234_v59   ;;  %v3576_v22 = vpop.permute.xlu1 %255  ;;  %v2083_v59 = vld [vmem:[%s4492_s6 + $0x18] sm:$0xff] }
  0x8e   :  { %1385 = vperm.xlu1 %2917, %v1235_v58   ;;  %v2490_v58 = vunpack.c.h.bf16 %v2488_v55 }
  0x90   :  { %2863 = vmatmul.mubr.msk.bf16.gmra.mxu0 %vm668_vm0, %v2947_v60  ;;  %v3599_v30 = vpop.permute.xlu0 %320  ;;  %v2082_v60 = vld [vmem:[%s4492_s6 + $0x10] sm:$0xff] }
  0x91   :  { %2866 = vmatprep.mubr.msk.bf16.mxu0 %vm668_vm0, %v2948_v61  ;;  %1300 = vperm.xlu0 %2916, %v1218_v63   ;;  %v3591_v27 = vpop.permute.xlu1 %325  ;;  %v2503_v61 = vld [vmem:[%s4493_s7 + $0x8] sm:$0xff]  }
  0x92   :  { %1305 = vperm.xlu1 %2917, %v1219_v62  }
  0x94   :  { %v3617_v36 = vpop.permute.xlu0 %240 }
  0x95   :  { %1370 = vperm.xlu0 %2916, %v1232_v2   ;;  %v3614_v35 = vpop.permute.xlu1 %245  ;;  %v2493_v2 = vunpack.c.l.bf16 %v2503_v61 }
  0x96   :  { %1375 = vperm.xlu1 %2917, %v1233_v1   ;;  %v2918_v1 = vpack.i.bf16 %v2490_v58, %v2489_v57 }
  0x98   :  { %2867 = vmatmul.mubr.msk.bf16.gmra.mxu0 %vm668_vm0, %v2949_v5  ;;  %v3639_v44 = vpop.permute.xlu0 %310  ;;  %v2494_v5 = vunpack.c.h.bf16 %v2503_v61 }
  0x99   :  { %2870 = vmatprep.mubr.msk.bf16.mxu0 %vm668_vm0, %v2950_v6  ;;  %1290 = vperm.xlu0 %2916, %v1216_v8   ;;  %v3631_v41 = vpop.permute.xlu1 %315  ;;  %v2084_v6 = vld [vmem:[%s4492_s6 + $0x20] sm:$0xff] }
  0x9a   :  { %1295 = vperm.xlu1 %2917, %v1217_v7   ;;  %v2923_v7 = vpack.i.bf16 %v2494_v5, %v2493_v2 }
  0x9c   :  { %v3654_v49 = vpop.permute.xlu0 %230 }
  0x9d   :  { %1360 = vperm.xlu0 %2916, %v1230_v12   ;;  %v3652_v48 = vpop.permute.xlu1 %235  ;;  %v2504_v12 = vld [vmem:[%s4493_s7 + $0x10] sm:$0xff]  }
  0x9e   :  { %1365 = vperm.xlu1 %2917, %v1231_v11   ;;  %v2085_v11 = vld [vmem:[%s4492_s6 + $0x28] sm:$0xff] }
  0xa0   :  { %2871 = vmatmul.mubr.msk.bf16.gmra.mxu0 %vm668_vm0, %v2951_v13  ;;  %v3674_v56 = vpop.permute.xlu0 %300 }
  0xa1   :  { %2874 = vmatprep.mubr.msk.bf16.mxu0 %vm668_vm0, %v2952_v14  ;;  %1280 = vperm.xlu0 %2916, %v1214_v17   ;;  %v3663_v52 = vpop.permute.xlu1 %305  ;;  %v2497_v14 = vunpack.c.l.bf16 %v2504_v12 }
  0xa2   :  { %1285 = vperm.xlu1 %2917, %v1215_v16   ;;  %v2086_v16 = vld [vmem:[%s4492_s6 + $0x30] sm:$0xff] }
  0xa4   :  { %v3687_v63 = vpop.permute.xlu0 %220 }
  0xa5   :  { %1350 = vperm.xlu0 %2916, %v1228_v20   ;;  %v3685_v62 = vpop.permute.xlu1 %225  ;;  %v2498_v20 = vunpack.c.h.bf16 %v2504_v12 }
  0xa6   :  { %1355 = vperm.xlu1 %2917, %v1229_v19  }
  0xa8   :  { %2875 = vmatmul.mubr.msk.bf16.gmra.mxu0 %vm668_vm0, %v2953_v21  ;;  %v3700_v13 = vpop.permute.xlu0 %290  ;;  %v2087_v21 = vld [vmem:[%s4492_s6 + $0x38] sm:$0xff] }
  0xa9   :  { %2878 = vmatprep.mubr.msk.bf16.mxu0 %vm668_vm0, %v2954_v23  ;;  %1270 = vperm.xlu0 %2916, %v1212_v26   ;;  %v3692_v8 = vpop.permute.xlu1 %295  ;;  %v2505_v23 = vld [vmem:[%s4493_s7 + $0x18] sm:$0xff]  }
  0xaa   :  { %1275 = vperm.xlu1 %2917, %v1213_v25   ;;  %v2502_v25 = vunpack.c.h.bf16 %v2505_v23  ;;  %v2501_v26 = vunpack.c.l.bf16 %v2505_v23 }
  0xac   :  { %v211_v19 = vpop.permute.xlu0 %210 }
  0xad   :  { %1340 = vperm.xlu0 %2916, %v1226_v29   ;;  %v216_v17 = vpop.permute.xlu1 %215 }
  0xae   :  { %1345 = vperm.xlu1 %2917, %v1227_v28  }
  0xb0   :  { %2879 = vmatmul.mubr.msk.bf16.gmra.mxu0 %vm668_vm0, %v2955_v31  ;;  %v3713_v29 = vpop.permute.xlu0 %280  ;;  %v2318_v31 = vld [vmem:[#allocation2] sm:$0x1] }
  0xb1   :  { %2882 = vmatprep.mubr.msk.bf16.mxu0 %vm668_vm0, %v2956_v32  ;;  %1260 = vperm.xlu0 %2916, %v1210_v34   ;;  %v3711_v28 = vpop.permute.xlu1 %285 }
  0xb2   :  { %1265 = vperm.xlu1 %2917, %v1211_v33  }
  0xb4   :  { %v201_v33 = vpop.permute.xlu0 %200 }
  0xb5   :  { %1330 = vperm.xlu0 %2916, %v1224_v38   ;;  %v206_v32 = vpop.permute.xlu1 %205  ;;  %v2962_v38 = vld [vmem:[%s4489_s3 + $0x4] ss:$16 sps:$4 sm:$0xff]  }
  0xb6   :  { %1335 = vperm.xlu1 %2917, %v1225_v37  }
  0xb8   :  { %2883 = vmatmul.mubr.msk.bf16.gmra.mxu0 %vm668_vm0, %v2957_v39  ;;  %v3717_v37 = vpop.permute.xlu0 %270  ;;  %v2965_v39 = vld [vmem:[%s4489_s3 + $0x84] ss:$16 sps:$4 sm:$0xff]  }
  0xb9   :  { %2886 = vmatprep.mubr.msk.bf16.mxu0 %vm668_vm0, %v2958_v40  ;;  %1250 = vperm.xlu0 %2916, %v1208_v43   ;;  %v3715_v34 = vpop.permute.xlu1 %275  ;;  %4505 = vst [vmem:[#allocation6_spill] sm:$0xff] %v3717_v37 }
  0xba   :  { %1255 = vperm.xlu1 %2917, %v1209_v42   ;;  %1782 = vmatprep.mubr.bf16.mxu1 %v2965_v39 }
  0xbc   :  { %v191_v42 = vpop.permute.xlu0 %190 }
  0xbd   :  { %1320 = vperm.xlu0 %2916, %v1222_v46   ;;  %v196_v40 = vpop.permute.xlu1 %195 }
  0xbe   :  { %1325 = vperm.xlu1 %2917, %v1223_v45  }
  0xc0   :  { %2887 = vmatmul.mubr.msk.bf16.gmra.mxu0 %vm668_vm0, %v2959_v47  ;;  %v3727_v45 = vpop.permute.xlu0 %500 }
  0xc1   :  { %1240 = vperm.xlu0 %2916, %v1206_v51   ;;  %1750 = vmatprep.mubr.bf16.mxu0 %v2962_v38  ;;  %v3725_v43 = vpop.permute.xlu1 %505  ;;  %4507 = vst [vmem:[#allocation8_spill] sm:$0xff] %v3727_v45 }
  0xc2   :  { %1245 = vperm.xlu1 %2917, %v1207_v50   ;;  %4506 = vst [vmem:[#allocation7_spill] sm:$0xff] %v3725_v43 }
  0xc4   :  { %v3731_v47 = vpop.permute.xlu0 %420 }
  0xc5   :  { %2090 = vperm.xlu0 %2916, %v2080_v54   ;;  %v3729_v46 = vpop.permute.xlu1 %425  ;;  %4509 = vst [vmem:[#allocation10_spill] sm:$0xff] %v3731_v47 }
  0xc6   :  { %2095 = vperm.xlu1 %2917, %v2081_v53   ;;  %4508 = vst [vmem:[#allocation9_spill] sm:$0xff] %v3729_v46 }
  0xc8   :  { %v3735_v51 = vpop.permute.xlu0 %490 }
  0xc9   :  { %2100 = vperm.xlu0 %2916, %v2082_v60   ;;  %v3733_v50 = vpop.permute.xlu1 %495  ;;  %4511 = vst [vmem:[#allocation12_spill] sm:$0xff] %v3735_v51 }
  0xca   :  { %2105 = vperm.xlu1 %2917, %v2083_v59   ;;  %4510 = vst [vmem:[#allocation11_spill] sm:$0xff] %v3733_v50 }
  0xcc   :  { %v3739_v54 = vpop.permute.xlu0 %410 }
  0xcd   :  { %2919 = vperm.xlu0 %2916, %v2918_v1   ;;  %v3737_v53 = vpop.permute.xlu1 %415  ;;  %4513 = vst [vmem:[#allocation14_spill] sm:$0xff] %v3739_v54 }
  0xce   :  { %2110 = vperm.xlu1 %2917, %v2084_v6   ;;  %4512 = vst [vmem:[#allocation13_spill] sm:$0xff] %v3737_v53 }
  0xd0   :  { %v3743_v59 = vpop.permute.xlu0 %480 }
  0xd1   :  { %2924 = vperm.xlu0 %2916, %v2923_v7   ;;  %v3741_v58 = vpop.permute.xlu1 %485  ;;  %4515 = vst [vmem:[#allocation16_spill] sm:$0xff] %v3743_v59 }
  0xd2   :  { %2115 = vperm.xlu1 %2917, %v2085_v11   ;;  %4514 = vst [vmem:[#allocation15_spill] sm:$0xff] %v3741_v58 }
  0xd5   :  { %2120 = vperm.xlu0 %2916, %v2086_v16   ;;  %v3755_v12 = vpop.permute.xlu1 %405  ;;  %v3759_v16 = vpop.permute.xlu0 %400 }
  0xd6   :  { %2279 = vperm.xlu1 %2917, %v2497_v14   ;;  %4520 = vst [vmem:[#allocation21_spill] sm:$0xff] %v3755_v12  ;;  %4521 = vst [vmem:[#allocation22_spill] sm:$0xff] %v3759_v16 }
  0xd9   :  { %2125 = vperm.xlu0 %2916, %v2087_v21   ;;  %v3775_v39 = vpop.permute.xlu0 %470 }
  0xda   :  { %2284 = vperm.xlu1 %2917, %v2498_v20   ;;  %4525 = vst [vmem:[#allocation26_spill] sm:$0xff] %v3775_v39 }
  0xdd   :  { %2289 = vperm.xlu0 %2916, %v2501_v26  }
  0xde   :  { %2294 = vperm.xlu1 %2917, %v2502_v25  }
  0xe1   :  { %2321 = vperm.xlu0 %2916, %v2318_v31   ;;  %v3767_v31 = vpop.permute.xlu1 %475 }
  0xe2   :  { %4522 = vst [vmem:[#allocation23_spill] sm:$0xff] %v3767_v31 }
 0x108   :  { %v2828_v55 = vpop.f32.mrf.mxu0 }
 0x109   :  { %v3745_v61 = vadd.f32 %v2828_v55, %v201_v33  ;;  %v3781_v55 = vpop.permute.xlu1 %395 }
 0x10a   :  { %v823_v57 = vpop.f32.mrf.mxu0  ;;  %4526 = vst [vmem:[#allocation27_spill] sm:$0xff] %v3781_v55 }
 0x10b   :  { %4516 = vst [vmem:[#allocation17_spill] sm:$0xff] %v3745_v61  ;;  %v3749_v5 = vadd.f32 %v823_v57, %v191_v42  ;;  %v3783_v57 = vpop.permute.xlu0 %390 }
 0x10c   :  { %v2829_v60 = vpop.f32.mrf.mxu0  ;;  %4527 = vst [vmem:[#allocation28_spill] sm:$0xff] %v3783_v57 }
 0x10d   :  { %v3747_v1 = vadd.f32 %v2829_v60, %v206_v32  ;;  %4518 = vst [vmem:[#allocation19_spill] sm:$0xff] %v3749_v5 }
 0x10e   :  { %v826_v2 = vpop.f32.mrf.mxu0 }
 0x10f   :  { %4517 = vst [vmem:[#allocation18_spill] sm:$0xff] %v3747_v1  ;;  %v3753_v7 = vadd.f32 %v826_v2, %v196_v40 }
 0x110   :  { %v2832_v11 = vpop.f32.mrf.mxu0 }
 0x111   :  { %4519 = vst [vmem:[#allocation20_spill] sm:$0xff] %v3753_v7  ;;  %v3762_v23 = vadd.f32 %v2832_v11, %v3687_v63  ;;  %v3787_v11 = vpop.permute.xlu1 %465 }
 0x112   :  { %v839_v20 = vpop.f32.mrf.mxu0  ;;  %4528 = vst [vmem:[#allocation29_spill] sm:$0xff] %v3787_v11 }
 0x113   :  { %v3769_v32 = vadd.f32 %v839_v20, %v211_v19 }
 0x114   :  { %v2833_v21 = vpop.f32.mrf.mxu0 }
 0x115   :  { %v3765_v25 = vadd.f32 %v2833_v21, %v3685_v62  ;;  %4523 = vst [vmem:[#allocation24_spill] sm:$0xff] %v3769_v32  ;;  %v3793_v14 = vpop.permute.xlu1 %385 }
 0x116   :  { %v842_v26 = vpop.f32.mrf.mxu0 }
 0x117   :  { %v3773_v38 = vadd.f32 %v842_v26, %v216_v17  ;;  %v3789_v17 = vpop.permute.xlu0 %460 }
 0x118   :  { %v2836_v40 = vpop.f32.mrf.mxu0  ;;  %4529 = vst [vmem:[#allocation30_spill] sm:$0xff] %v3789_v17 }
 0x119   :  { %4524 = vst [vmem:[#allocation25_spill] sm:$0xff] %v3773_v38  ;;  %v3803_v57 = vpop.permute.xlu1 %455 }
 0x11a   :  { %v3779_v42 = vpop.f32.mrf.mxu0  ;;  %4531 = vst [vmem:[#allocation32_spill] sm:$0xff] %v3803_v57 }
 0x11b   :  { %v3795_v6 = vpop.permute.xlu0 %380 }
 0x11c   :  { %v2837_v62 = vpop.f32.mrf.mxu0 }
 0x11d   :  { %v3811_v16 = vpop.permute.xlu1 %375 }
 0x11e   :  { %v3785_v19 = vpop.f32.mrf.mxu0 }
 0x11f   :  { %v3805_v55 = vpop.permute.xlu0 %450 }
 0x120   :  { %v2840_v60 = vpop.f32.mrf.mxu0  ;;  %4532 = vst [vmem:[#allocation33_spill] sm:$0xff] %v3805_v55 }
 0x121   :  { %v3817_v50 = vpop.permute.xlu1 %445  ;;  %v880_v46 = vadd.f32 %v2840_v60, %v3515_v0 }
 0x122   :  { %v871_v2 = vpop.f32.mrf.mxu0  ;;  %4533 = vst [vmem:[#allocation34_spill] sm:$0xff] %v3817_v50 }
 0x123   :  { %v3813_v31 = vpop.permute.xlu0 %370  ;;  %v872_v0 = vadd.f32 %v871_v2, %v3581_v24 }
 0x124   :  { %v2841_v20 = vpop.f32.mrf.mxu0 }
 0x125   :  { %v366_v53 = vpop.permute.xlu1 %365  ;;  %v883_v45 = vadd.f32 %v2841_v20, %v3538_v9 }
 0x126   :  { %v874_v21 = vpop.f32.mrf.mxu0 }
 0x127   :  { %v3819_v51 = vpop.permute.xlu0 %440  ;;  %v1085_v1 = vpack.c.bf16 %v883_v45, %v880_v46  ;;  %v875_v50 = vadd.f32 %v874_v21, %v3576_v22  ;;  %v4535_v46 = vmov 0  }
 0x128   :  { %v3791_v26 = vpop.f32.mrf.mxu0  ;;  %4534 = vst [vmem:[#allocation35_spill] sm:$0xff] %v3819_v51 }
 0x129   :  { %v3826_v51 = vpop.permute.xlu1 %435 }
 0x12a   :  { %v3797_v63 = vpop.f32.mrf.mxu0 }
 0x12b   :  { %4530 = vst [vmem:[#allocation31_spill] sm:$0xff] %v3797_v63  ;;  %v361_v43 = vpop.permute.xlu0 %360 }
 0x12c   :  { %v3799_v33 = vpop.f32.mrf.mxu0 }
 0x12e   :  { %v3801_v4 = vpop.f32.mrf.mxu0 }
 0x12f   :  { %v3831_v20 = vpop.permute.xlu0 %430 }
 0x130   :  { %v3807_v11 = vpop.f32.mrf.mxu0 }
 0x132   :  { %v3809_v17 = vpop.f32.mrf.mxu0 }
 0x134   :  { %v2849_v39 = vpop.f32.mrf.mxu0 }
 0x136   :  { %v3815_v12 = vpop.f32.mrf.mxu0 }
 0x138   :  { %v2852_v59 = vpop.f32.mrf.mxu0 }
 0x139   :  { %v928_v45 = vadd.f32 %v2852_v59, %v3599_v30  ;;  %v356_v30 = vpop.permute.xlu1 %355 }
 0x13a   :  { %v919_v54 = vpop.f32.mrf.mxu0 }
 0x13c   :  { %v2853_v57 = vpop.f32.mrf.mxu0 }
 0x13d   :  { %v931_v38 = vadd.f32 %v2853_v57, %v3591_v27  ;;  %v1084_v27 = vpack.c.bf16 %v875_v50, %v872_v0  ;;  %v907_v57 = vadd.f32 %v3815_v12, %v3692_v8  ;;  %v899_v12 = vadd.f32 %v3799_v33, %v3711_v28 }
 0x13e   :  { %v922_v58 = vpop.f32.mrf.mxu0  ;;  %v896_v28 = vadd.f32 %v3791_v26, %v3713_v29  ;;  %v4537_v29 = vld [vmem:[#allocation6_spill] sm:$0xff]  ;;  %v4538_v26 = vld [vmem:[#allocation31_spill] sm:$0xff] }
 0x140   :  { %v2856_v55 = vpop.f32.mrf.mxu0 }
 0x141   :  { %v944_v7 = vadd.f32 %v2856_v55, %v3523_v3  ;;  %v1117_v55 = vmax.bf16 %v4535_v46, %v1085_v1  ;;  %v915_v1 = vadd.f32 %v2849_v39, %v3663_v52 }
 0x142   :  { %v935_v47 = vpop.f32.mrf.mxu0 }
 0x143   :  { %v936_v63 = vadd.f32 %v935_v47, %v3563_v18  ;;  %v923_v18 = vadd.f32 %v922_v58, %v3631_v41  ;;  %v351_v41 = vpop.permute.xlu0 %350  ;;  %v1116_v58 = vmax.bf16 %v4535_v46, %v1084_v27 }
 0x144   :  { %v2857_v5 = vpop.f32.mrf.mxu0 }
 0x145   :  { %v947_v61 = vadd.f32 %v2857_v5, %v3541_v10  ;;  %v867_v10 = vadd.f32 %v2837_v62, %v3614_v35  ;;  %v920_v35 = vadd.f32 %v919_v54, %v3639_v44 }
 0x146   :  { %v938_v32 = vpop.f32.mrf.mxu0 }
 0x147   :  { %v1093_v37 = vpack.c.bf16 %v947_v61, %v944_v7  ;;  %v939_v9 = vadd.f32 %v938_v32, %v3555_v15  ;;  %v864_v15 = vadd.f32 %v2836_v40, %v3617_v36  ;;  %v1091_v61 = vpack.c.bf16 %v931_v38, %v928_v45 }
 0x148   :  { %v2860_v3 = vpop.f32.mrf.mxu0  ;;  %v859_v36 = vadd.f32 %v3785_v19, %v3652_v48  ;;  %v1090_v44 = vpack.c.bf16 %v923_v18, %v920_v35  ;;  %v856_v40 = vadd.f32 %v3779_v42, %v3654_v49  ;;  %v912_v48 = vadd.f32 %v3807_v11, %v3674_v56 }
 0x149   :  { %v1092_v22 = vpack.c.bf16 %v939_v9, %v936_v63  ;;  %v1125_v5 = vmax.bf16 %v4535_v46, %v1093_v37  ;;  %v1083_v37 = vpack.c.bf16 %v867_v10, %v864_v15  ;;  %v3842_v59 = vadd.f32 %v2860_v3, %v361_v43 }
 0x14a   :  { %v951_v47 = vpop.f32.mrf.mxu0  ;;  %v1082_v62 = vpack.c.bf16 %v859_v36, %v856_v40  ;;  %v1089_v60 = vpack.c.bf16 %v915_v1, %v912_v48  ;;  %v1122_v49 = vmax.bf16 %v4535_v46, %v1090_v44  ;;  %v904_v42 = vadd.f32 %v3809_v17, %v3700_v13  ;;  %v4545_v36 = vld [vmem:[#allocation20_spill] sm:$0xff] }
 0x14b   :  { %2546 = vmatprep.subr.bf16.mxu0 %v1125_v5  ;;  %2890 = vmatprep.subr.bf16.mxu1 %v1125_v5  ;;  %v1124_v24 = vmax.bf16 %v4535_v46, %v1092_v22  ;;  %v3850_v32 = vadd.f32 %v951_v47, %v351_v41  ;;  %v1115_v39 = vmax.bf16 %v4535_v46, %v1083_v37  ;;  %v2963_v40 = vld [vmem:[%s4489_s3 + $0x80] ss:$16 sps:$4 sm:$0xff]   ;;  %v2966_v48 = vld [vmem:[%s4489_s3 + $0x24] ss:$16 sps:$4 sm:$0xff]  }
 0x14c   :  { %v2861_v7 = vpop.f32.mrf.mxu0  ;;  %2547 = vmatpush3.bf16.msra.mxu0 %v1117_v55  ;;  %2898 = vmatpush3.bf16.msra.mxu1 %v1117_v55  ;;  %v1114_v8 = vmax.bf16 %v4535_v46, %v1082_v62  ;;  %v1088_v21 = vpack.c.bf16 %v907_v57, %v904_v42  ;;  %v1087_v10 = vpack.c.bf16 %v899_v12, %v896_v28  ;;  %v2977_v28 = vld [vmem:[%s4489_s3 + $0xc0] ss:$16 sps:$4 sm:$0xff]  }
 0x14d   :  { %v3844_v50 = vadd.f32 %v2861_v7, %v366_v53  ;;  %2548 = vmatprep.subr.bf16.mxu0 %v1124_v24  ;;  %2891 = vmatprep.subr.bf16.mxu1 %v1124_v24  ;;  %v1123_v53 = vmax.bf16 %v4535_v46, %v1091_v61  ;;  %v891_v45 = vadd.f32 %v3801_v4, %v3715_v34  ;;  %v4542_v61 = vld [vmem:[#allocation18_spill] sm:$0xff]  ;;  %v4543_v24 = vld [vmem:[#allocation17_spill] sm:$0xff] }
 0x14e   :  { %v954_v54 = vpop.f32.mrf.mxu0  ;;  %v1120_v22 = vmax.bf16 %v4535_v46, %v1088_v21  ;;  %v888_v55 = vadd.f32 %v4538_v26, %v4537_v29  ;;  %v1119_v4 = vmax.bf16 %v4535_v46, %v1087_v10  ;;  %v4544_v35 = vpack.c.bf16 %v4542_v61, %v4543_v24  ;;  %v2980_v10 = vld [vmem:[%s4489_s3 + $0xe4] ss:$16 sps:$4 sm:$0xff]   ;;  %v2982_v26 = vld [vmem:[%s4489_s3 + $0x60] ss:$16 sps:$4 sm:$0xff]  }
 0x14f   :  { %v1095_v43 = vpack.c.bf16 %v3844_v50, %v3842_v59  ;;  %v3854_v38 = vadd.f32 %v954_v54, %v356_v30  ;;  %v2999_v59 = vld [vmem:[%s4489_s3 + $0x1a4] ss:$16 sps:$4 sm:$0xff]   ;;  %v3001_v50 = vld [vmem:[%s4489_s3 + $0x1a0] ss:$16 sps:$4 sm:$0xff]  }
 0x150   :  { %v2864_v63 = vpop.f32.mrf.mxu0  ;;  %2549 = vmatpush3.bf16.msra.mxu0 %v1116_v58  ;;  %2899 = vmatpush3.bf16.msra.mxu1 %v1116_v58  ;;  %v1086_v15 = vpack.c.bf16 %v891_v45, %v888_v55  ;;  %v1111_v7 = vmax.bf16 %v4535_v46, %v4544_v35  ;;  %v4546_v58 = vld [vmem:[#allocation19_spill] sm:$0xff]  ;;  %v4550_v35 = vld [vmem:[#allocation8_spill] sm:$0xff] }
 0x151   :  { %v1094_v52 = vpack.c.bf16 %v3854_v38, %v3850_v32  ;;  %2550 = vmatprep.subr.bf16.mxu0 %v1123_v53  ;;  %2892 = vmatprep.subr.bf16.mxu1 %v1123_v53  ;;  %v3870_v56 = vadd.f32 %v2864_v63, %v3795_v6  ;;  %v4547_v1 = vpack.c.bf16 %v4545_v36, %v4546_v58  ;;  %v2960_v53 = vld [vmem:[%s4489_s3] ss:$16 sps:$4 sm:$0xff]   ;;  %v3002_v32 = vld [vmem:[%s4489_s3 + $0x1c4] ss:$16 sps:$4 sm:$0xff]  }
 0x152   :  { %v967_v19 = vpop.f32.mrf.mxu0  ;;  %v1118_v37 = vmax.bf16 %v4535_v46, %v1086_v15  ;;  %v2983_v55 = vld [vmem:[%s4489_s3 + $0xe0] ss:$16 sps:$4 sm:$0xff]   ;;  %v3005_v38 = vld [vmem:[%s4489_s3 + $0x1e4] ss:$16 sps:$4 sm:$0xff]  }
 0x153   :  { %v3879_v13 = vadd.f32 %v967_v19, %v3813_v31  ;;  %v4536_v31 = vpack.c.bf16 %v3765_v25, %v3762_v23  ;;  %v4539_v23 = vld [vmem:[#allocation25_spill] sm:$0xff]  ;;  %v4540_v25 = vld [vmem:[#allocation24_spill] sm:$0xff]  ;;  %v1110_v44 = vmax.bf16 %v4535_v46, %v4547_v1 }
 0x154   :  { %v2865_v2 = vpop.f32.mrf.mxu0  ;;  %2551 = vmatpush3.bf16.msra.mxu0 %v1115_v39  ;;  %2900 = vmatpush3.bf16.msra.mxu1 %v1115_v39  ;;  %v4541_v27 = vpack.c.bf16 %v4539_v23, %v4540_v25  ;;  %v2968_v39 = vld [vmem:[%s4489_s3 + $0xa4] ss:$16 sps:$4 sm:$0xff]   ;;  %v4552_v1 = vld [vmem:[#allocation13_spill] sm:$0xff] }
 0x155   :  { %v3873_v11 = vadd.f32 %v2865_v2, %v3793_v14  ;;  %2552 = vmatprep.subr.bf16.mxu0 %v1122_v49  ;;  %2893 = vmatprep.subr.bf16.mxu1 %v1122_v49  ;;  %v1121_v14 = vmax.bf16 %v4535_v46, %v1089_v60  ;;  %v2970_v60 = vld [vmem:[%s4489_s3 + $0x20] ss:$16 sps:$4 sm:$0xff]   ;;  %v2972_v2 = vld [vmem:[%s4489_s3 + $0x44] ss:$16 sps:$4 sm:$0xff]  }
 0x156   :  { %v970_v9 = vpop.f32.mrf.mxu0  ;;  %v1112_v18 = vmax.bf16 %v4535_v46, %v4541_v27  ;;  %v2971_v49 = vld [vmem:[%s4489_s3 + $0xa0] ss:$16 sps:$4 sm:$0xff]   ;;  %v2984_v25 = vld [vmem:[%s4489_s3 + $0x104] ss:$16 sps:$4 sm:$0xff]  }
 0x157   :  { %v1097_v17 = vpack.c.bf16 %v3873_v11, %v3870_v56  ;;  %v3884_v6 = vadd.f32 %v970_v9, %v3811_v16  ;;  %v1113_v16 = vmax.bf16 %v4535_v46, %v4536_v31  ;;  %v4548_v27 = vld [vmem:[#allocation9_spill] sm:$0xff] }
 0x158   :  { %v3887_v0 = vpop.f32.mrf.mxu0  ;;  %2553 = vmatpush3.bf16.msra.mxu0 %v1114_v8  ;;  %2901 = vmatpush3.bf16.msra.mxu1 %v1114_v8  ;;  %v2974_v8 = vld [vmem:[%s4489_s3 + $0xc4] ss:$16 sps:$4 sm:$0xff]  }
 0x159   :  { %v1096_v33 = vpack.c.bf16 %v3884_v6, %v3879_v13  ;;  %2554 = vmatprep.subr.bf16.mxu0 %v1121_v14  ;;  %2894 = vmatprep.subr.bf16.mxu1 %v1121_v14  ;;  %v2976_v14 = vld [vmem:[%s4489_s3 + $0x40] ss:$16 sps:$4 sm:$0xff]   ;;  %v1126_v6 = vmax.bf16 %v4535_v46, %v1094_v52 }
 0x15a   :  { %v3897_v3 = vpop.f32.mrf.mxu0  ;;  %v3007_v52 = vld [vmem:[%s4489_s3 + $0x1e0] ss:$16 sps:$4 sm:$0xff]  }
 0x15b   :  { %v1128_v56 = vmax.bf16 %v4535_v46, %v1096_v33  ;;  %v2998_v33 = vld [vmem:[%s4489_s3 + $0x180] ss:$16 sps:$4 sm:$0xff]  }
 0x15c   :  { %v3902_v5 = vpop.f32.mrf.mxu0  ;;  %2555 = vmatpush3.bf16.msra.mxu0 %v1113_v16  ;;  %2902 = vmatpush3.bf16.msra.mxu1 %v1113_v16  ;;  %v2978_v16 = vld [vmem:[%s4489_s3 + $0x64] ss:$16 sps:$4 sm:$0xff]  }
 0x15d   :  { %2556 = vmatprep.subr.bf16.mxu0 %v1120_v22  ;;  %2895 = vmatprep.subr.bf16.mxu1 %v1120_v22 }
 0x15e   :  { %v3910_v47 = vpop.f32.mrf.mxu0 }
 0x160   :  { %v2872_v34 = vpop.f32.mrf.mxu0  ;;  %2557 = vmatpush3.bf16.msra.mxu0 %v1112_v18  ;;  %2903 = vmatpush3.bf16.msra.mxu1 %v1112_v18 }
 0x161   :  { %2558 = vmatprep.subr.bf16.mxu0 %v1119_v4  ;;  %2896 = vmatprep.subr.bf16.mxu1 %v1119_v4  ;;  %v4549_v4 = vld [vmem:[#allocation10_spill] sm:$0xff] }
 0x162   :  { %v3917_v30 = vpop.f32.mrf.mxu0  ;;  %v1008_v61 = vadd.f32 %v2872_v34, %v4549_v4  ;;  %v2986_v34 = vld [vmem:[%s4489_s3 + $0x100] ss:$16 sps:$4 sm:$0xff]  }
 0x163   :  { %v4560_v4 = vld [vmem:[#allocation22_spill] sm:$0xff] }
 0x164   :  { %v2873_v41 = vpop.f32.mrf.mxu0  ;;  %2559 = vmatpush3.bf16.msra.mxu0 %v1111_v7  ;;  %2904 = vmatpush3.bf16.msra.mxu1 %v1111_v7 }
 0x165   :  { %2560 = vmatprep.subr.bf16.mxu0 %v1118_v37  ;;  %2897 = vmatprep.subr.bf16.mxu1 %v1118_v37  ;;  %v1011_v18 = vadd.f32 %v2873_v41, %v4548_v27  ;;  %v4551_v37 = vld [vmem:[#allocation7_spill] sm:$0xff] }
 0x166   :  { %v1002_v54 = vpop.f32.mrf.mxu0 }
 0x167   :  { %v1101_v58 = vpack.c.bf16 %v1011_v18, %v1008_v61  ;;  %v4559_v18 = vld [vmem:[#allocation23_spill] sm:$0xff]  ;;  %v992_v61 = vadd.f32 %v3887_v0, %v4560_v4 }
 0x168   :  { %v3930_v63 = vpop.f32.mrf.mxu0  ;;  %2561 = vmatpush3.bf16.msra.mxu0 %v1110_v44  ;;  %2905 = vmatpush3.bf16.msra.mxu1 %v1110_v44  ;;  %v1003_v44 = vadd.f32 %v1002_v54, %v4552_v1  ;;  %v4557_v54 = vld [vmem:[#allocation16_spill] sm:$0xff]  ;;  %v3020_v4 = vld [vmem:[%s4489_s3 + $0x8c] ss:$16 sps:$4 sm:$0xff]  }
 0x169   :  { %v2989_v0 = vld [vmem:[%s4489_s3 + $0x120] ss:$16 sps:$4 sm:$0xff]  }
 0x16a   :  { %v3938_v62 = vpop.f32.mrf.mxu0 }
 0x16b   :  { %1751 = vmatmul.mubr.bf16.vlgmr.msra.gmra.mxu0 %v2960_v53  ;;  %1783 = vmatmul.mubr.bf16.vlgmr.msra.gmra.mxu1 %v2963_v40  ;;  %v4553_v40 = vld [vmem:[#allocation15_spill] sm:$0xff] }
 0x16c   :  { %v3940_v57 = vpop.f32.mrf.mxu0  ;;  %1758 = vmatprep.mubr.bf16.mxu0 %v2966_v48  ;;  %1790 = vmatprep.mubr.bf16.mxu1 %v2968_v39  ;;  %v4554_v39 = vld [vmem:[#allocation12_spill] sm:$0xff] }
 0x16e   :  { %v3942_v19 = vpop.f32.mrf.mxu0 }
 0x170   :  { %v3950_v42 = vpop.f32.mrf.mxu0 }
 0x172   :  { %v3958_v12 = vpop.f32.mrf.mxu0 }
 0x173   :  { %1759 = vmatmul.mubr.bf16.gmra.mxu0 %v2970_v60  ;;  %1791 = vmatmul.mubr.bf16.gmra.mxu1 %v2971_v49  ;;  %v4555_v49 = vld [vmem:[#allocation11_spill] sm:$0xff] }
 0x174   :  { %v2881_v21 = vpop.f32.mrf.mxu0  ;;  %1766 = vmatprep.mubr.bf16.mxu0 %v2972_v2  ;;  %1798 = vmatprep.mubr.bf16.mxu1 %v2974_v8  ;;  %v4556_v8 = vld [vmem:[#allocation14_spill] sm:$0xff] }
 0x176   :  { %v3960_v9 = vpop.f32.mrf.mxu0 }
 0x178   :  { %v2884_v31 = vpop.f32.mrf.mxu0 }
 0x17a   :  { %v1047_v45 = vpop.f32.mrf.mxu0 }
 0x17b   :  { %1767 = vmatmul.mubr.bf16.gmra.mxu0 %v2976_v14  ;;  %1799 = vmatmul.mubr.bf16.gmra.mxu1 %v2977_v28  ;;  %v1000_v14 = vadd.f32 %v3917_v30, %v4556_v8  ;;  %v2987_v28 = vld [vmem:[%s4489_s3 + $0x124] ss:$16 sps:$4 sm:$0xff]  }
 0x17c   :  { %v2885_v22 = vpop.f32.mrf.mxu0  ;;  %1774 = vmatprep.mubr.bf16.mxu0 %v2978_v16  ;;  %1806 = vmatprep.mubr.bf16.mxu1 %v2980_v10  ;;  %v1056_v16 = vadd.f32 %v2884_v31, %v4557_v54  ;;  %v4561_v31 = vld [vmem:[#allocation26_spill] sm:$0xff] }
 0x17d   :  { %v1059_v48 = vadd.f32 %v2885_v22, %v4553_v40  ;;  %v2993_v54 = vld [vmem:[%s4489_s3 + $0x164] ss:$16 sps:$4 sm:$0xff]  }
 0x17e   :  { %v1050_v29 = vpop.f32.mrf.mxu0 }
 0x17f   :  { %v1107_v27 = vpack.c.bf16 %v1059_v48, %v1056_v16  ;;  %v4569_v16 = vld [vmem:[#allocation35_spill] sm:$0xff] }
 0x180   :  { %v2888_v23 = vpop.f32.mrf.mxu0 }
 0x181   :  { %v1072_v7 = vadd.f32 %v2888_v23, %v4550_v35  ;;  %v1133_v23 = vmax.bf16 %v4535_v46, %v1101_v58  ;;  %v1139_v1 = vmax.bf16 %v4535_v46, %v1107_v27  ;;  %v3014_v27 = vld [vmem:[%s4489_s3 + $0x4c] ss:$16 sps:$4 sm:$0xff]  }
 0x182   :  { %v1063_v15 = vpop.f32.mrf.mxu0 }
 0x183   :  { %1775 = vmatmul.mubr.bf16.gmra.mxu0 %v2982_v26  ;;  %1807 = vmatmul.mubr.bf16.gmra.mxu1 %v2983_v55  ;;  %v1064_v60 = vadd.f32 %v1063_v15, %v4554_v39  ;;  %v4558_v26 = vld [vmem:[#allocation21_spill] sm:$0xff]  ;;  %v1051_v15 = vadd.f32 %v1050_v29, %v4559_v18 }
 0x184   :  { %v2889_v24 = vpop.f32.mrf.mxu0  ;;  %1814 = vmatprep.mubr.bf16.mxu1 %v2984_v25  ;;  %v995_v55 = vadd.f32 %v3902_v5, %v4558_v26  ;;  %v1100_v25 = vpack.c.bf16 %v1003_v44, %v1000_v14  ;;  %v4562_v5 = vld [vmem:[#allocation27_spill] sm:$0xff]  ;;  %v4564_v44 = vld [vmem:[#allocation28_spill] sm:$0xff] }
 0x185   :  { %v1075_v36 = vadd.f32 %v2889_v24, %v4551_v37  ;;  %v1048_v24 = vadd.f32 %v1047_v45, %v4561_v31  ;;  %v2990_v45 = vld [vmem:[%s4489_s3 + $0x144] ss:$16 sps:$4 sm:$0xff]   ;;  %v3016_v18 = vld [vmem:[%s4489_s3 + $0x48] ss:$16 sps:$4 sm:$0xff]   ;;  %v3023_v31 = vld [vmem:[%s4489_s3 + $0xac] ss:$16 sps:$4 sm:$0xff]  }
 0x186   :  { %v1066_v53 = vpop.f32.mrf.mxu0  ;;  %v1099_v35 = vpack.c.bf16 %v995_v55, %v992_v61  ;;  %v1132_v37 = vmax.bf16 %v4535_v46, %v1100_v25  ;;  %v1016_v55 = vadd.f32 %v3938_v62, %v3831_v20  ;;  %v1127_v20 = vmax.bf16 %v4535_v46, %v1095_v43  ;;  %v3004_v43 = vld [vmem:[%s4489_s3 + $0x1c0] ss:$16 sps:$4 sm:$0xff]   ;;  %v3010_v62 = vld [vmem:[%s4489_s3 + $0xc] ss:$16 sps:$4 sm:$0xff]   ;;  %v3013_v25 = vld [vmem:[%s4489_s3 + $0x28] ss:$16 sps:$4 sm:$0xff]  }
 0x187   :  { %v1109_v41 = vpack.c.bf16 %v1075_v36, %v1072_v7  ;;  %v1067_v2 = vadd.f32 %v1066_v53, %v4555_v49  ;;  %v987_v7 = vadd.f32 %v3910_v47, %v4562_v5  ;;  %v4563_v36 = vld [vmem:[#allocation29_spill] sm:$0xff]  ;;  %v1106_v58 = vpack.c.bf16 %v1051_v15, %v1048_v24  ;;  %v4565_v47 = vld [vmem:[#allocation30_spill] sm:$0xff] }
 0x188   :  { %v1043_v29 = vadd.f32 %v2881_v21, %v4563_v36  ;;  %v984_v53 = vadd.f32 %v3897_v3, %v4564_v44  ;;  %v1040_v40 = vadd.f32 %v3950_v42, %v4565_v47  ;;  %v1131_v21 = vmax.bf16 %v4535_v46, %v1099_v35  ;;  %v4567_v3 = vld [vmem:[#allocation33_spill] sm:$0xff]  ;;  %v4568_v42 = vld [vmem:[#allocation34_spill] sm:$0xff] }
 0x189   :  { %v1108_v10 = vpack.c.bf16 %v1067_v2, %v1064_v60  ;;  %v1141_v22 = vmax.bf16 %v4535_v46, %v1109_v41  ;;  %v4566_v60 = vld [vmem:[#allocation32_spill] sm:$0xff]  ;;  %v1138_v49 = vmax.bf16 %v4535_v46, %v1106_v58  ;;  %v1032_v2 = vadd.f32 %v3958_v12, %v4567_v3  ;;  %v3017_v15 = vld [vmem:[%s4489_s3 + $0x6c] ss:$16 sps:$4 sm:$0xff]  }
 0x18a   :  { %v1098_v48 = vpack.c.bf16 %v987_v7, %v984_v53  ;;  %v1105_v39 = vpack.c.bf16 %v1043_v29, %v1040_v40  ;;  %v1035_v41 = vadd.f32 %v3960_v9, %v4566_v60  ;;  %v1027_v8 = vadd.f32 %v3940_v57, %v4568_v42  ;;  %v2992_v9 = vld [vmem:[%s4489_s3 + $0x140] ss:$16 sps:$4 sm:$0xff]   ;;  %v3022_v61 = vld [vmem:[%s4489_s3 + $0x88] ss:$16 sps:$4 sm:$0xff]   ;;  %v3026_v35 = vld [vmem:[%s4489_s3 + $0xcc] ss:$16 sps:$4 sm:$0xff]  }
 0x18b   :  { %1815 = vmatmul.mubr.bf16.gmra.mxu1 %v2986_v34  ;;  %2658 = vmatprep.subr.bf16.mxu1 %v1141_v22  ;;  %v1140_v30 = vmax.bf16 %v4535_v46, %v1108_v10  ;;  %v1024_v12 = vadd.f32 %v3930_v63, %v4569_v16  ;;  %v1129_v57 = vmax.bf16 %v4535_v46, %v1097_v17  ;;  %v2996_v63 = vld [vmem:[%s4489_s3 + $0x184] ss:$16 sps:$4 sm:$0xff]   ;;  %v3025_v24 = vld [vmem:[%s4489_s3 + $0xa8] ss:$16 sps:$4 sm:$0xff]   ;;  %v3029_v7 = vld [vmem:[%s4489_s3 + $0xec] ss:$16 sps:$4 sm:$0xff]  }
 0x18c   :  { %2659 = vmatpush3.bf16.msra.mxu1 %v1133_v23  ;;  %1822 = vmatprep.mubr.bf16.mxu1 %v2987_v28  ;;  %v1130_v34 = vmax.bf16 %v4535_v46, %v1098_v48  ;;  %v1104_v14 = vpack.c.bf16 %v1035_v41, %v1032_v2  ;;  %v1137_v28 = vmax.bf16 %v4535_v46, %v1105_v39  ;;  %v3011_v23 = vld [vmem:[%s4489_s3 + $0x2c] ss:$16 sps:$4 sm:$0xff]   ;;  %v3028_v5 = vld [vmem:[%s4489_s3 + $0xc8] ss:$16 sps:$4 sm:$0xff]  }
 0x18d   :  { %2660 = vmatprep.subr.bf16.mxu1 %v1140_v30  ;;  %v1103_v10 = vpack.c.bf16 %v1027_v8, %v1024_v12  ;;  %v1019_v22 = vadd.f32 %v3942_v19, %v3826_v51  ;;  %v2995_v51 = vld [vmem:[%s4489_s3 + $0x160] ss:$16 sps:$4 sm:$0xff]   ;;  %v3008_v19 = vld [vmem:[%s4489_s3 + $0x8] ss:$16 sps:$4 sm:$0xff]   ;;  %v3032_v36 = vld [vmem:[%s4489_s3 + $0x10c] ss:$16 sps:$4 sm:$0xff]  }
 0x18e   :  { %v1136_v26 = vmax.bf16 %v4535_v46, %v1104_v14  ;;  %v3019_v30 = vld [vmem:[%s4489_s3 + $0x68] ss:$16 sps:$4 sm:$0xff]   ;;  %v3035_v58 = vld [vmem:[%s4489_s3 + $0x12c] ss:$16 sps:$4 sm:$0xff]   ;;  %v4183_v14 = vpop.permute.xlu1 %1395 }
 0x18f   :  { %v1102_v11 = vpack.c.bf16 %v1019_v22, %v1016_v55  ;;  %v1135_v17 = vmax.bf16 %v4535_v46, %v1103_v10  ;;  %v3034_v29 = vld [vmem:[%s4489_s3 + $0x108] ss:$16 sps:$4 sm:$0xff]   ;;  %v3041_v53 = vld [vmem:[%s4489_s3 + $0x16c] ss:$16 sps:$4 sm:$0xff]   ;;  %4570 = vst [vmem:[#allocation6_spill] sm:$0xff] %v4183_v14 }
 0x190   :  { %2661 = vmatpush3.bf16.msra.mxu1 %v1132_v37  ;;  %v3031_v37 = vld [vmem:[%s4489_s3 + $0xe8] ss:$16 sps:$4 sm:$0xff]   ;;  %v3044_v47 = vld [vmem:[%s4489_s3 + $0x18c] ss:$16 sps:$4 sm:$0xff]  }
 0x191   :  { %2662 = vmatprep.subr.bf16.mxu1 %v1139_v1  ;;  %v1134_v13 = vmax.bf16 %v4535_v46, %v1102_v11  ;;  %v3037_v1 = vld [vmem:[%s4489_s3 + $0x128] ss:$16 sps:$4 sm:$0xff]   ;;  %v3050_v3 = vld [vmem:[%s4489_s3 + $0x1cc] ss:$16 sps:$4 sm:$0xff]  }
 0x192   :  { %v3040_v44 = vld [vmem:[%s4489_s3 + $0x148] ss:$16 sps:$4 sm:$0xff]   ;;  %v3053_v12 = vld [vmem:[%s4489_s3 + $0x1ec] ss:$16 sps:$4 sm:$0xff]  }
 0x193   :  { %1823 = vmatmul.mubr.bf16.gmra.mxu1 %v2989_v0  ;;  %v3038_v0 = vld [vmem:[%s4489_s3 + $0x14c] ss:$16 sps:$4 sm:$0xff]   ;;  %v3046_v40 = vld [vmem:[%s4489_s3 + $0x188] ss:$16 sps:$4 sm:$0xff]  }
 0x194   :  { %2663 = vmatpush3.bf16.msra.mxu1 %v1131_v21  ;;  %1830 = vmatprep.mubr.bf16.mxu1 %v2990_v45  ;;  %v3043_v45 = vld [vmem:[%s4489_s3 + $0x168] ss:$16 sps:$4 sm:$0xff]   ;;  %v3047_v21 = vld [vmem:[%s4489_s3 + $0x1ac] ss:$16 sps:$4 sm:$0xff]  }
 0x195   :  { %2664 = vmatprep.subr.bf16.mxu1 %v1138_v49  ;;  %v3049_v49 = vld [vmem:[%s4489_s3 + $0x1a8] ss:$16 sps:$4 sm:$0xff]  }
 0x196   :  { %v3052_v16 = vld [vmem:[%s4489_s3 + $0x1c8] ss:$16 sps:$4 sm:$0xff]  }
 0x198   :  { %2665 = vmatpush3.bf16.msra.mxu1 %v1130_v34 }
 0x199   :  { %2666 = vmatprep.subr.bf16.mxu1 %v1137_v28  ;;  %v4185_v28 = vpop.permute.xlu0 %1390 }
 0x19a   :  { %4571 = vst [vmem:[#allocation31_spill] sm:$0xff] %v4185_v28 }
 0x19b   :  { %1831 = vmatmul.mubr.bf16.gmra.mxu1 %v2992_v9 }
 0x19c   :  { %2667 = vmatpush3.bf16.msra.mxu1 %v1129_v57  ;;  %1838 = vmatprep.mubr.bf16.mxu1 %v2993_v54 }
 0x19d   :  { %2668 = vmatprep.subr.bf16.mxu1 %v1136_v26  ;;  %v4197_v26 = vpop.permute.xlu1 %1315  ;;  %v4199_v55 = vpop.permute.xlu0 %1310 }
 0x1a0   :  { %2669 = vmatpush3.bf16.msra.mxu1 %v1128_v56 }
 0x1a1   :  { %2670 = vmatprep.subr.bf16.mxu1 %v1135_v17 }
 0x1a3   :  { %1839 = vmatmul.mubr.bf16.gmra.mxu1 %v2995_v51  ;;  %v3055_v51 = vld [vmem:[%s4489_s3 + $0x1e8] ss:$16 sps:$4 sm:$0xff]  }
 0x1a4   :  { %2671 = vmatpush3.bf16.msra.mxu1 %v1127_v20  ;;  %1846 = vmatprep.mubr.bf16.mxu1 %v2996_v63  ;;  %v4206_v20 = vpop.permute.xlu1 %1385 }
 0x1a5   :  { %2672 = vmatprep.subr.bf16.mxu1 %v1134_v13  ;;  %4572 = vst [vmem:[#allocation25_spill] sm:$0xff] %v4206_v20  ;;  %v4208_v13 = vpop.permute.xlu0 %1380 }
 0x1a6   :  { %4573 = vst [vmem:[#allocation24_spill] sm:$0xff] %v4208_v13 }
 0x1a8   :  { %2673 = vmatpush3.bf16.msra.mxu1 %v1126_v6 }
 0x1ab   :  { %1847 = vmatmul.mubr.bf16.gmra.mxu1 %v2998_v33 }
 0x1ac   :  { %1854 = vmatprep.mubr.bf16.mxu1 %v2999_v59 }
 0x1b3   :  { %1855 = vmatmul.mubr.bf16.gmra.mxu1 %v3001_v50 }
 0x1b4   :  { %1862 = vmatprep.mubr.bf16.mxu1 %v3002_v32 }
 0x1bb   :  { %1863 = vmatmul.mubr.bf16.gmra.mxu1 %v3004_v43  ;;  %v4214_v43 = vpop.permute.xlu1 %1305 }
 0x1bc   :  { %1870 = vmatprep.mubr.bf16.mxu1 %v3005_v38  ;;  %v4216_v38 = vpop.permute.xlu0 %1300 }
 0x1c3   :  { %1871 = vmatmul.mubr.bf16.gmra.mxu1 %v3007_v52 }
 0x1c4   :  { %1911 = vmatprep.mubr.bf16.mxu1 %v3010_v62 }
 0x1cb   :  { %1912 = vmatmul.mubr.bf16.vlgmr.msra.gmra.mxu1 %v3008_v19 }
 0x1cc   :  { %1919 = vmatprep.mubr.bf16.mxu1 %v3011_v23 }
 0x1d3   :  { %1920 = vmatmul.mubr.bf16.gmra.mxu1 %v3013_v25  ;;  %v4220_v25 = vpop.permute.xlu1 %1375 }
 0x1d4   :  { %1927 = vmatprep.mubr.bf16.mxu1 %v3014_v27  ;;  %4574 = vst [vmem:[#allocation18_spill] sm:$0xff] %v4220_v25  ;;  %v4222_v27 = vpop.permute.xlu0 %1370 }
 0x1d5   :  { %4575 = vst [vmem:[#allocation17_spill] sm:$0xff] %v4222_v27 }
 0x1db   :  { %1928 = vmatmul.mubr.bf16.gmra.mxu1 %v3016_v18 }
 0x1dc   :  { %1935 = vmatprep.mubr.bf16.mxu1 %v3017_v15 }
 0x1e3   :  { %1936 = vmatmul.mubr.bf16.gmra.mxu1 %v3019_v30 }
 0x1e4   :  { %1943 = vmatprep.mubr.bf16.mxu1 %v3020_v4 }
 0x1eb   :  { %1944 = vmatmul.mubr.bf16.gmra.mxu1 %v3022_v61 }
 0x1ec   :  { %1951 = vmatprep.mubr.bf16.mxu1 %v3023_v31  ;;  %v4228_v31 = vpop.permute.xlu1 %1295 }
 0x1f3   :  { %1952 = vmatmul.mubr.bf16.gmra.mxu1 %v3025_v24  ;;  %v4230_v24 = vpop.permute.xlu0 %1290 }
 0x1f4   :  { %1959 = vmatprep.mubr.bf16.mxu1 %v3026_v35 }
 0x1fb   :  { %1960 = vmatmul.mubr.bf16.gmra.mxu1 %v3028_v5 }
 0x1fc   :  { %1967 = vmatprep.mubr.bf16.mxu1 %v3029_v7 }
 0x203   :  { %1968 = vmatmul.mubr.bf16.gmra.mxu1 %v3031_v37 }
 0x204   :  { %1975 = vmatprep.mubr.bf16.mxu1 %v3032_v36  ;;  %v4234_v36 = vpop.permute.xlu1 %1365 }
 0x205   :  { %4576 = vst [vmem:[#allocation20_spill] sm:$0xff] %v4234_v36 }
 0x20b   :  { %1976 = vmatmul.mubr.bf16.gmra.mxu1 %v3034_v29  ;;  %v4236_v29 = vpop.permute.xlu0 %1360 }
 0x20c   :  { %1983 = vmatprep.mubr.bf16.mxu1 %v3035_v58  ;;  %4577 = vst [vmem:[#allocation19_spill] sm:$0xff] %v4236_v29 }
 0x213   :  { %1984 = vmatmul.mubr.bf16.gmra.mxu1 %v3037_v1 }
 0x214   :  { %1991 = vmatprep.mubr.bf16.mxu1 %v3038_v0 }
 0x21b   :  { %1992 = vmatmul.mubr.bf16.gmra.mxu1 %v3040_v44 }
 0x21c   :  { %1999 = vmatprep.mubr.bf16.mxu1 %v3041_v53 }
 0x223   :  { %2000 = vmatmul.mubr.bf16.gmra.mxu1 %v3043_v45  ;;  %v4242_v45 = vpop.permute.xlu1 %1285 }
 0x224   :  { %2007 = vmatprep.mubr.bf16.mxu1 %v3044_v47  ;;  %v4244_v47 = vpop.permute.xlu0 %1280 }
 0x22b   :  { %v2586_v48 = vpop.f32.mrf.mxu1  ;;  %2008 = vmatmul.mubr.bf16.gmra.mxu1 %v3046_v40 }
 0x22c   :  { %2015 = vmatprep.mubr.bf16.mxu1 %v3047_v21 }
 0x22d   :  { %v2587_v39 = vpop.f32.mrf.mxu1 }
 0x22e   :  { %v4173_v60 = vadd.f32 %v2587_v39, %v2586_v48 }
 0x22f   :  { %v2589_v41 = vpop.f32.mrf.mxu1 }
 0x231   :  { %v2590_v2 = vpop.f32.mrf.mxu1 }
 0x232   :  { %v4181_v34 = vadd.f32 %v2590_v2, %v2589_v41  ;;  %v4248_v41 = vpop.permute.xlu1 %1355  ;;  %v2562_v2 = vpop.f32.mrf.mxu0 }
 0x233   :  { %v2592_v42 = vpop.f32.mrf.mxu1  ;;  %2016 = vmatmul.mubr.bf16.gmra.mxu1 %v3049_v49  ;;  %4578 = vst [vmem:[#allocation9_spill] sm:$0xff] %v4248_v41  ;;  %v4250_v49 = vpop.permute.xlu0 %1350 }
 0x234   :  { %2023 = vmatprep.mubr.bf16.mxu1 %v3050_v3  ;;  %4579 = vst [vmem:[#allocation10_spill] sm:$0xff] %v4250_v49 }
 0x235   :  { %v2593_v8 = vpop.f32.mrf.mxu1 }
 0x236   :  { %v4187_v9 = vadd.f32 %v2593_v8, %v2592_v42 }
 0x237   :  { %v2595_v54 = vpop.f32.mrf.mxu1 }
 0x239   :  { %v2596_v57 = vpop.f32.mrf.mxu1 }
 0x23a   :  { %v4195_v10 = vadd.f32 %v2596_v57, %v2595_v54  ;;  %v4256_v57 = vpop.permute.xlu1 %1275 }
 0x23b   :  { %v2598_v22 = vpop.f32.mrf.mxu1  ;;  %2024 = vmatmul.mubr.bf16.gmra.mxu1 %v3052_v16  ;;  %v2563_v16 = vpop.f32.mrf.mxu0 }
 0x23c   :  { %2031 = vmatprep.mubr.bf16.mxu1 %v3053_v12 }
 0x23d   :  { %v2599_v56 = vpop.f32.mrf.mxu1 }
 0x23e   :  { %v4201_v11 = vadd.f32 %v2599_v56, %v2598_v22  ;;  %v4258_v22 = vpop.permute.xlu0 %1270 }
 0x23f   :  { %v2601_v17 = vpop.f32.mrf.mxu1 }
 0x241   :  { %v2602_v63 = vpop.f32.mrf.mxu1 }
 0x242   :  { %v4210_v6 = vadd.f32 %v2602_v63, %v2601_v17 }
 0x243   :  { %v2604_v33 = vpop.f32.mrf.mxu1  ;;  %2032 = vmatmul.mubr.bf16.gmra.mxu1 %v3055_v51  ;;  %v2565_v51 = vpop.f32.mrf.mxu0 }
 0x245   :  { %v2605_v59 = vpop.f32.mrf.mxu1 }
 0x246   :  { %v4212_v50 = vadd.f32 %v2605_v59, %v2604_v33  ;;  %v4262_v59 = vpop.permute.xlu1 %1345 }
 0x247   :  { %v2607_v32 = vpop.f32.mrf.mxu1 }
 0x249   :  { %v2608_v52 = vpop.f32.mrf.mxu1 }
 0x24a   :  { %v4218_v62 = vadd.f32 %v2608_v52, %v2607_v32  ;;  %v4264_v32 = vpop.permute.xlu0 %1340 }
 0x24b   :  { %v2610_v19 = vpop.f32.mrf.mxu1 }
 0x24d   :  { %v2611_v23 = vpop.f32.mrf.mxu1 }
 0x24e   :  { %v4224_v18 = vadd.f32 %v2611_v23, %v2610_v19  ;;  %v2566_v19 = vpop.f32.mrf.mxu0 }
 0x24f   :  { %v2613_v15 = vpop.f32.mrf.mxu1 }
 0x251   :  { %v2614_v30 = vpop.f32.mrf.mxu1 }
 0x252   :  { %v4226_v4 = vadd.f32 %v2614_v30, %v2613_v15 }
 0x253   :  { %v2616_v61 = vpop.f32.mrf.mxu1 }
 0x255   :  { %v2617_v35 = vpop.f32.mrf.mxu1 }
 0x256   :  { %v4232_v5 = vadd.f32 %v2617_v35, %v2616_v61  ;;  %v2568_v61 = vpop.f32.mrf.mxu0 }
 0x257   :  { %v2619_v7 = vpop.f32.mrf.mxu1 }
 0x259   :  { %v2620_v37 = vpop.f32.mrf.mxu1 }
 0x25a   :  { %v4238_v58 = vadd.f32 %v2620_v37, %v2619_v7  ;;  %v4270_v7 = vpop.permute.xlu1 %1265  ;;  %v4272_v37 = vpop.permute.xlu0 %1260 }
 0x25b   :  { %v2622_v1 = vpop.f32.mrf.mxu1 }
 0x25d   :  { %v2623_v0 = vpop.f32.mrf.mxu1 }
 0x25e   :  { %v4240_v44 = vadd.f32 %v2623_v0, %v2622_v1 }
 0x25f   :  { %v2625_v53 = vpop.f32.mrf.mxu1 }
 0x261   :  { %v2626_v40 = vpop.f32.mrf.mxu1 }
 0x262   :  { %v4246_v21 = vadd.f32 %v2626_v40, %v2625_v53  ;;  %v2569_v53 = vpop.f32.mrf.mxu0 }
 0x263   :  { %v2628_v48 = vpop.f32.mrf.mxu1 }
 0x265   :  { %v2629_v39 = vpop.f32.mrf.mxu1 }
 0x266   :  { %v4252_v3 = vadd.f32 %v2629_v39, %v2628_v48  ;;  %v4276_v39 = vpop.permute.xlu1 %1335 }
 0x267   :  { %v2631_v42 = vpop.f32.mrf.mxu1 }
 0x268   :  { %4580 = vst [vmem:[#allocation8_spill] sm:$0xff] %v4252_v3 }
 0x269   :  { %v2632_v8 = vpop.f32.mrf.mxu1 }
 0x26a   :  { %v4254_v54 = vadd.f32 %v2632_v8, %v2631_v42  ;;  %v4278_v42 = vpop.permute.xlu0 %1330  ;;  %v1256_v46 = vpop.permute.xlu1 %1255 }
 0x26b   :  { %v2634_v12 = vpop.f32.mrf.mxu1 }
 0x26c   :  { %4581 = vst [vmem:[#allocation7_spill] sm:$0xff] %v4254_v54 }
 0x26d   :  { %v2635_v56 = vpop.f32.mrf.mxu1 }
 0x26e   :  { %v4260_v17 = vadd.f32 %v2635_v56, %v2634_v12  ;;  %v2571_v12 = vpop.f32.mrf.mxu0  ;;  %v1251_v14 = vpop.permute.xlu0 %1250 }
 0x26f   :  { %v2637_v63 = vpop.f32.mrf.mxu1 }
 0x270   :  { %4582 = vst [vmem:[#allocation13_spill] sm:$0xff] %v4260_v17 }
 0x271   :  { %v2638_v33 = vpop.f32.mrf.mxu1 }
 0x272   :  { %v4266_v52 = vadd.f32 %v2638_v33, %v2637_v63  ;;  %v4288_v25 = vpop.permute.xlu0 %1320 }
 0x273   :  { %v2640_v23 = vpop.f32.mrf.mxu1 }
 0x274   :  { %4583 = vst [vmem:[#allocation15_spill] sm:$0xff] %v4266_v52 }
 0x275   :  { %v2641_v15 = vpop.f32.mrf.mxu1 }
 0x276   :  { %v4268_v30 = vadd.f32 %v2641_v15, %v2640_v23  ;;  %v2572_v23 = vpop.f32.mrf.mxu0 }
 0x277   :  { %v2643_v35 = vpop.f32.mrf.mxu1  ;;  %v2573_v49 = vadd.f32 %v2572_v23, %v2571_v12 }
 0x278   :  { %4584 = vst [vmem:[#allocation12_spill] sm:$0xff] %v4268_v30  ;;  %v2574_v28 = vpop.f32.mrf.mxu0 }
 0x279   :  { %v2644_v1 = vpop.f32.mrf.mxu1 }
 0x27a   :  { %v4274_v0 = vadd.f32 %v2644_v1, %v2643_v35 }
 0x27b   :  { %v2646_v40 = vpop.f32.mrf.mxu1 }
 0x27c   :  { %4585 = vst [vmem:[#allocation11_spill] sm:$0xff] %v4274_v0  ;;  %v4286_v0 = vpop.permute.xlu1 %1325 }
 0x27d   :  { %v2647_v48 = vpop.f32.mrf.mxu1 }
 0x27e   :  { %v4280_v8 = vadd.f32 %v2647_v48, %v2646_v40  ;;  %v2575_v48 = vpop.f32.mrf.mxu0 }
 0x27f   :  { %v2649_v56 = vpop.f32.mrf.mxu1 }
 0x280   :  { %4586 = vst [vmem:[#allocation14_spill] sm:$0xff] %v4280_v8  ;;  %v2577_v27 = vpop.f32.mrf.mxu0  ;;  %v1246_v36 = vpop.permute.xlu1 %1245 }
 0x281   :  { %v2650_v63 = vpop.f32.mrf.mxu1 }
 0x282   :  { %v4282_v33 = vadd.f32 %v2650_v63, %v2649_v56  ;;  %v2564_v63 = vadd.f32 %v2563_v16, %v2562_v2  ;;  %v2578_v54 = vpop.f32.mrf.mxu0 }
 0x283   :  { %v2652_v15 = vpop.f32.mrf.mxu1 }
 0x284   :  { %4587 = vst [vmem:[#allocation16_spill] sm:$0xff] %v4282_v33  ;;  %v2567_v33 = vadd.f32 %v2566_v19, %v2565_v51  ;;  %v2580_v51 = vpop.f32.mrf.mxu0 }
 0x285   :  { %v2653_v35 = vpop.f32.mrf.mxu1 }
 0x286   :  { %v4284_v1 = vadd.f32 %v2653_v35, %v2652_v15  ;;  %v1241_v15 = vpop.permute.xlu0 %1240  ;;  %v1756_v17 = vadd.f32 %v2567_v33, %v1246_v36 }
 0x287   :  { %v2655_v20 = vpop.f32.mrf.mxu1 }
 0x288   :  { %4588 = vst [vmem:[#allocation21_spill] sm:$0xff] %v4284_v1  ;;  %v1753_v1 = vadd.f32 %v2564_v63, %v1241_v15  ;;  %v1764_v63 = vadd.f32 %v2573_v49, %v1256_v46 }
 0x289   :  { %v2656_v13 = vpop.f32.mrf.mxu1 }
 0x28a   :  { %v4290_v40 = vadd.f32 %v2656_v13, %v2655_v20 }
 0x28b   :  { %v2674_v8 = vpop.f32.mrf.mxu1 }
 0x28c   :  { %4589 = vst [vmem:[#allocation23_spill] sm:$0xff] %v4290_v40  ;;  %v2570_v40 = vadd.f32 %v2569_v53, %v2568_v61  ;;  %v2579_v61 = vadd.f32 %v2578_v54, %v2577_v27 }
 0x28d   :  { %v2675_v56 = vpop.f32.mrf.mxu1 }
 0x28e   :  { %v2676_v30 = vadd.f32 %v2675_v56, %v2674_v8  ;;  %v1761_v56 = vadd.f32 %v2570_v40, %v1251_v14  ;;  %v1772_v46 = vadd.f32 %v2579_v61, %v4270_v7 }
 0x28f   :  { %v2677_v52 = vpop.f32.mrf.mxu1 }
 0x290   :  { %v4292_v3 = vadd.f32 %v2676_v30, %v1753_v1 }
 0x291   :  { %v2678_v35 = vpop.f32.mrf.mxu1 }
 0x292   :  { %v2679_v29 = vadd.f32 %v2678_v35, %v2677_v52  ;;  %v2581_v52 = vpop.f32.mrf.mxu0 }
 0x293   :  { %v2680_v41 = vpop.f32.mrf.mxu1  ;;  %v2582_v27 = vadd.f32 %v2581_v52, %v2580_v51  ;;  %v1785_v51 = vadd.f32 %v4173_v60, %v4244_v47  ;;  %v1793_v47 = vadd.f32 %v4187_v9, %v4230_v24 }
 0x294   :  { %v4294_v20 = vadd.f32 %v2679_v29, %v1756_v17  ;;  %v2576_v17 = vadd.f32 %v2575_v48, %v2574_v28 }
 0x295   :  { %v2681_v13 = vpop.f32.mrf.mxu1 }
 0x296   :  { %v2040_v2 = vpack.c.bf16 %v4294_v20, %v4292_v3  ;;  %v2682_v16 = vadd.f32 %v2681_v13, %v2680_v41  ;;  %v2583_v41 = vpop.f32.mrf.mxu0  ;;  %v1769_v14 = vadd.f32 %v2576_v17, %v4272_v37  ;;  %v1777_v37 = vadd.f32 %v2582_v27, %v4258_v22  ;;  %v3058_v22 = vld [vmem:[%s4491_s5 + $0x4] ss:$8 sps:$4 sm:$0xff]   ;;  %v3064_v20 = vld [vmem:[%s4491_s5 + $0x20] ss:$8 sps:$4 sm:$0xff]  }
 0x297   :  { %v2683_v19 = vpop.f32.mrf.mxu1  ;;  %2200 = vmatprep.mubr.bf16.mxu0 %v3058_v22  ;;  %v3062_v3 = vld [vmem:[%s4491_s5 + $0x24] ss:$8 sps:$4 sm:$0xff]  }
 0x298   :  { %v4298_v15 = vadd.f32 %v2682_v16, %v1761_v56  ;;  %v2584_v40 = vpop.f32.mrf.mxu0 }
 0x299   :  { %v2684_v8 = vpop.f32.mrf.mxu1  ;;  %v2585_v54 = vadd.f32 %v2584_v40, %v2583_v41 }
 0x29a   :  { %v2685_v36 = vadd.f32 %v2684_v8, %v2683_v19 }
 0x29b   :  { %v2686_v33 = vpop.f32.mrf.mxu1  ;;  %v1780_v7 = vadd.f32 %v2585_v54, %v4256_v57  ;;  %v1796_v54 = vadd.f32 %v4195_v10, %v4228_v31 }
 0x29c   :  { %v4300_v30 = vadd.f32 %v2685_v36, %v1764_v63 }
 0x29d   :  { %v2687_v29 = vpop.f32.mrf.mxu1 }
 0x29e   :  { %v2041_v53 = vpack.c.bf16 %v4300_v30, %v4298_v15  ;;  %v2688_v12 = vadd.f32 %v2687_v29, %v2686_v33  ;;  %v3059_v15 = vld [vmem:[%s4491_s5 + $0x14] ss:$8 sps:$4 sm:$0xff]   ;;  %v3061_v30 = vld [vmem:[%s4491_s5 + $0x10] ss:$8 sps:$4 sm:$0xff]  }
 0x29f   :  { %v2689_v23 = vpop.f32.mrf.mxu1 }
 0x2a0   :  { %v4306_v13 = vadd.f32 %v2688_v12, %v1769_v14 }
 0x2a1   :  { %v2690_v1 = vpop.f32.mrf.mxu1 }
 0x2a2   :  { %v2691_v49 = vadd.f32 %v2690_v1, %v2689_v23  ;;  %v1788_v23 = vadd.f32 %v4181_v34, %v4242_v45 }
 0x2a3   :  { %v2692_v35 = vpop.f32.mrf.mxu1 }
 0x2a4   :  { %v4308_v16 = vadd.f32 %v2691_v49, %v1772_v46 }
 0x2a5   :  { %v2693_v28 = vpop.f32.mrf.mxu1 }
 0x2a6   :  { %v2042_v48 = vpack.c.bf16 %v4308_v16, %v4306_v13  ;;  %v2694_v19 = vadd.f32 %v2693_v28, %v2692_v35  ;;  %v3056_v16 = vld [vmem:[%s4491_s5] ss:$8 sps:$4 sm:$0xff]  }
 0x2a7   :  { %v2695_v8 = vpop.f32.mrf.mxu1 }
 0x2a8   :  { %v4314_v33 = vadd.f32 %v2694_v19, %v1777_v37 }
 0x2a9   :  { %v2696_v56 = vpop.f32.mrf.mxu1 }
 0x2aa   :  { %v2697_v63 = vadd.f32 %v2696_v56, %v2695_v8  ;;  %v1801_v56 = vadd.f32 %v4201_v11, %v4216_v38 }
 0x2ab   :  { %v2698_v36 = vpop.f32.mrf.mxu1 }
 0x2ac   :  { %v4316_v29 = vadd.f32 %v2697_v63, %v1780_v7 }
 0x2ad   :  { %v2699_v17 = vpop.f32.mrf.mxu1 }
 0x2ae   :  { %v2043_v52 = vpack.c.bf16 %v4316_v29, %v4314_v33  ;;  %v2700_v61 = vadd.f32 %v2699_v17, %v2698_v36  ;;  %v1804_v36 = vadd.f32 %v4210_v6, %v4214_v43 }
 0x2af   :  { %v2701_v12 = vpop.f32.mrf.mxu1 }
 0x2b0   :  { %v4325_v57 = vadd.f32 %v2700_v61, %v1785_v51  ;;  %v1809_v61 = vadd.f32 %v4212_v50, %v4199_v55 }
 0x2b1   :  { %v2702_v41 = vpop.f32.mrf.mxu1 }
 0x2b2   :  { %v2703_v1 = vadd.f32 %v2702_v41, %v2701_v12 }
 0x2b3   :  { %v2704_v14 = vpop.f32.mrf.mxu1 }
 0x2b4   :  { %v4329_v46 = vadd.f32 %v2703_v1, %v1788_v23  ;;  %v1812_v23 = vadd.f32 %v4218_v62, %v4197_v26 }
 0x2b5   :  { %v2705_v60 = vpop.f32.mrf.mxu1 }
 0x2b6   :  { %v2044_v49 = vpack.c.bf16 %v4329_v46, %v4325_v57  ;;  %v2706_v40 = vadd.f32 %v2705_v60, %v2704_v14  ;;  %v1817_v60 = vadd.f32 %v4224_v18, %v4288_v25 }
 0x2b7   :  { %v2707_v35 = vpop.f32.mrf.mxu1 }
 0x2b8   :  { %v4335_v28 = vadd.f32 %v2706_v40, %v1793_v47 }
 0x2b9   :  { %v2708_v27 = vpop.f32.mrf.mxu1 }
 0x2ba   :  { %v2709_v34 = vadd.f32 %v2708_v27, %v2707_v35  ;;  %v1820_v27 = vadd.f32 %v4226_v4, %v4286_v0 }
 0x2bb   :  { %v2710_v45 = vpop.f32.mrf.mxu1 }
 0x2bc   :  { %v4339_v19 = vadd.f32 %v2709_v34, %v1796_v54 }
 0x2bd   :  { %v2711_v8 = vpop.f32.mrf.mxu1 }
 0x2be   :  { %v2045_v9 = vpack.c.bf16 %v4339_v19, %v4335_v28  ;;  %v2712_v24 = vadd.f32 %v2711_v8, %v2710_v45  ;;  %v1825_v45 = vadd.f32 %v4232_v5, %v4278_v42 }
 0x2bf   :  { %v2713_v37 = vpop.f32.mrf.mxu1 }
 0x2c0   :  { %v4345_v7 = vadd.f32 %v2712_v24, %v1801_v56 }
 0x2c1   :  { %v2714_v63 = vpop.f32.mrf.mxu1 }
 0x2c2   :  { %v2715_v10 = vadd.f32 %v2714_v63, %v2713_v37  ;;  %v1828_v37 = vadd.f32 %v4238_v58, %v4276_v39 }
 0x2c3   :  { %v2716_v31 = vpop.f32.mrf.mxu1 }
 0x2c4   :  { %v4349_v17 = vadd.f32 %v2715_v10, %v1804_v36  ;;  %v1833_v10 = vadd.f32 %v4240_v44, %v4264_v32 }
 0x2c5   :  { %v2717_v51 = vpop.f32.mrf.mxu1 }
 0x2c6   :  { %v2046_v11 = vpack.c.bf16 %v4349_v17, %v4345_v7  ;;  %v2718_v38 = vadd.f32 %v2717_v51, %v2716_v31 }
 0x2c7   :  { %v2719_v12 = vpop.f32.mrf.mxu1 }
 0x2c8   :  { %v4355_v22 = vadd.f32 %v2718_v38, %v1809_v61  ;;  %v1836_v38 = vadd.f32 %v4246_v21, %v4262_v59 }
 0x2c9   :  { %v2720_v41 = vpop.f32.mrf.mxu1 }
 0x2ca   :  { %v2721_v6 = vadd.f32 %v2720_v41, %v2719_v12 }
 0x2cb   :  { %v2722_v43 = vpop.f32.mrf.mxu1 }
 0x2cc   :  { %v4359_v1 = vadd.f32 %v2721_v6, %v1812_v23 }
 0x2cd   :  { %v2723_v14 = vpop.f32.mrf.mxu1 }
 0x2ce   :  { %v2047_v55 = vpack.c.bf16 %v4359_v1, %v4355_v22  ;;  %v2724_v50 = vadd.f32 %v2723_v14, %v2722_v43  ;;  %v4590_v43 = vld [vmem:[#allocation10_spill] sm:$0xff]  ;;  %v4591_v14 = vld [vmem:[#allocation8_spill] sm:$0xff] }
 0x2cf   :  { %v2725_v47 = vpop.f32.mrf.mxu1 }
 0x2d0   :  { %v4365_v40 = vadd.f32 %v2724_v50, %v1817_v60  ;;  %v1841_v60 = vadd.f32 %v4591_v14, %v4590_v43  ;;  %v4592_v50 = vld [vmem:[#allocation9_spill] sm:$0xff]  ;;  %v4599_v43 = vld [vmem:[#allocation12_spill] sm:$0xff] }
 0x2d1   :  { %v2726_v35 = vpop.f32.mrf.mxu1 }
 0x2d2   :  { %v2727_v26 = vadd.f32 %v2726_v35, %v2725_v47  ;;  %v4593_v47 = vld [vmem:[#allocation7_spill] sm:$0xff] }
 0x2d3   :  { %v2728_v62 = vpop.f32.mrf.mxu1  ;;  %v1844_v35 = vadd.f32 %v4593_v47, %v4592_v50  ;;  %v4601_v50 = vld [vmem:[#allocation11_spill] sm:$0xff] }
 0x2d4   :  { %v4369_v54 = vadd.f32 %v2727_v26, %v1820_v27 }
 0x2d5   :  { %v2729_v34 = vpop.f32.mrf.mxu1 }
 0x2d6   :  { %v2048_v25 = vpack.c.bf16 %v4369_v54, %v4365_v40  ;;  %v2730_v18 = vadd.f32 %v2729_v34, %v2728_v62 }
 0x2d7   :  { %v2731_v8 = vpop.f32.mrf.mxu1 }
 0x2d8   :  { %v4375_v56 = vadd.f32 %v2730_v18, %v1825_v45 }
 0x2d9   :  { %v2732_v24 = vpop.f32.mrf.mxu1 }
 0x2da   :  { %v2733_v4 = vadd.f32 %v2732_v24, %v2731_v8  ;;  %v4594_v24 = vld [vmem:[#allocation19_spill] sm:$0xff] }
 0x2db   :  { %v2734_v0 = vpop.f32.mrf.mxu1 }
 0x2dc   :  { %v4379_v63 = vadd.f32 %v2733_v4, %v1828_v37  ;;  %v4595_v37 = vld [vmem:[#allocation13_spill] sm:$0xff] }
 0x2dd   :  { %v2735_v36 = vpop.f32.mrf.mxu1  ;;  %v1849_v4 = vadd.f32 %v4595_v37, %v4594_v24  ;;  %v4602_v24 = vld [vmem:[#allocation24_spill] sm:$0xff]  ;;  %v4603_v37 = vld [vmem:[#allocation14_spill] sm:$0xff] }
 0x2de   :  { %v2049_v5 = vpack.c.bf16 %v4379_v63, %v4375_v56  ;;  %v2736_v42 = vadd.f32 %v2735_v36, %v2734_v0  ;;  %v4596_v0 = vld [vmem:[#allocation20_spill] sm:$0xff]  ;;  %v4597_v36 = vld [vmem:[#allocation15_spill] sm:$0xff] }
 0x2df   :  { %v2737_v31 = vpop.f32.mrf.mxu1 }
 0x2e0   :  { %v4385_v51 = vadd.f32 %v2736_v42, %v1833_v10  ;;  %v1852_v10 = vadd.f32 %v4597_v36, %v4596_v0  ;;  %v4604_v0 = vld [vmem:[#allocation25_spill] sm:$0xff]  ;;  %v4605_v36 = vld [vmem:[#allocation16_spill] sm:$0xff] }
 0x2e1   :  { %v2738_v61 = vpop.f32.mrf.mxu1 }
 0x2e2   :  { %v2739_v58 = vadd.f32 %v2738_v61, %v2737_v31 }
 0x2e3   :  { %v2740_v39 = vpop.f32.mrf.mxu1 }
 0x2e4   :  { %v4389_v12 = vadd.f32 %v2739_v58, %v1836_v38 }
 0x2e5   :  { %v2741_v41 = vpop.f32.mrf.mxu1 }
 0x2e6   :  { %v2050_v23 = vpack.c.bf16 %v4389_v12, %v4385_v51  ;;  %v2742_v32 = vadd.f32 %v2741_v41, %v2740_v39 }
 0x2e7   :  { %v2743_v44 = vpop.f32.mrf.mxu1 }
 0x2e8   :  { %v2002_v21 = vadd.f32 %v2742_v32, %v1841_v60  ;;  %v4600_v60 = vld [vmem:[#allocation18_spill] sm:$0xff] }
 0x2e9   :  { %v2744_v6 = vpop.f32.mrf.mxu1  ;;  %v1860_v47 = vadd.f32 %v4601_v50, %v4600_v60  ;;  %v4608_v50 = vld [vmem:[#allocation6_spill] sm:$0xff] }
 0x2ea   :  { %v2745_v27 = vadd.f32 %v2744_v6, %v2743_v44  ;;  %v4598_v6 = vld [vmem:[#allocation17_spill] sm:$0xff] }
 0x2eb   :  { %v2746_v26 = vpop.f32.mrf.mxu1  ;;  %v1857_v14 = vadd.f32 %v4599_v43, %v4598_v6  ;;  %v4606_v43 = vld [vmem:[#allocation31_spill] sm:$0xff] }
 0x2ec   :  { %v2005_v59 = vadd.f32 %v2745_v27, %v1844_v35 }
 0x2ed   :  { %v2747_v62 = vpop.f32.mrf.mxu1 }
 0x2ee   :  { %v2051_v34 = vpack.c.bf16 %v2005_v59, %v2002_v21  ;;  %v2748_v18 = vadd.f32 %v2747_v62, %v2746_v26 }
 0x2ef   :  { %v2749_v45 = vpop.f32.mrf.mxu1 }
 0x2f0   :  { %v2010_v61 = vadd.f32 %v2748_v18, %v1849_v4  ;;  %v1865_v4 = vadd.f32 %v4603_v37, %v4602_v24  ;;  %v4610_v24 = vmov 0  }
 0x2f1   :  { %v2750_v8 = vpop.f32.mrf.mxu1  ;;  %v2062_v37 = vmax.bf16 %v4610_v24, %v2046_v11  ;;  %v2061_v22 = vmax.bf16 %v4610_v24, %v2045_v9  ;;  %v2060_v7 = vmax.bf16 %v4610_v24, %v2044_v49  ;;  %v2067_v17 = vmax.bf16 %v4610_v24, %v2051_v34 }
 0x2f2   :  { %v2751_v42 = vadd.f32 %v2750_v8, %v2749_v45  ;;  %v2059_v28 = vmax.bf16 %v4610_v24, %v2043_v52  ;;  %v2066_v19 = vmax.bf16 %v4610_v24, %v2050_v23  ;;  %v2058_v57 = vmax.bf16 %v4610_v24, %v2042_v48  ;;  %v2091_v48 = vpop.permute.xlu0 %2090  ;;  %v2096_v52 = vpop.permute.xlu1 %2095 }
 0x2f3   :  { %v2752_v31 = vpop.f32.mrf.mxu1  ;;  %v2065_v46 = vmax.bf16 %v4610_v24, %v2049_v5  ;;  %v2057_v33 = vmax.bf16 %v4610_v24, %v2041_v53  ;;  %v2064_v29 = vmax.bf16 %v4610_v24, %v2048_v25  ;;  %v2056_v13 = vmax.bf16 %v4610_v24, %v2040_v2  ;;  %v3065_v2 = vld [vmem:[%s4491_s5 + $0x34] ss:$8 sps:$4 sm:$0xff]   ;;  %v3067_v53 = vld [vmem:[%s4491_s5 + $0x30] ss:$8 sps:$4 sm:$0xff]   ;;  %s3095_s5 = smov [#allocation3]  }
 0x2f4   :  { %v2013_v38 = vadd.f32 %v2751_v42, %v1852_v10  ;;  %v1868_v10 = vadd.f32 %v4605_v36, %v4604_v0  ;;  %s2342_s20 = sshll.u32 %s3095_s5, 4  ;;  %s2343_s20 = int_to_ptr.vmem [resolvable:$true] %s2342_s20 }
 0x2f5   :  { %v2753_v58 = vpop.f32.mrf.mxu1  ;;  %s3072_s1 = scalar_lea.vmem %s2343_s20, 16  ;;  %s3076_s21 = scalar_lea.vmem %s2343_s20, 32 }
 0x2f6   :  { %v2052_v39 = vpack.c.bf16 %v2013_v38, %v2010_v61  ;;  %v2754_v44 = vadd.f32 %v2753_v58, %v2752_v31  ;;  %v2101_v9 = vpop.permute.xlu0 %2100  ;;  %v2106_v40 = vpop.permute.xlu1 %2105  ;;  %p3073_p0 = scmp.ne.s32.totalorder %s2343_s20, %s3072_s1  ;;  %p3077_p1 = scmp.lt.s32.totalorder %s2343_s20, %s2343_s20 }
 0x2f7   :  { %v2755_v41 = vpop.f32.mrf.mxu1  ;;  %p3078_p2 = scmp.lt.s32.totalorder %s3076_s21, %s3072_s1 }
 0x2f8   :  { %v2018_v26 = vadd.f32 %v2754_v44, %v1857_v14  ;;  %v4607_v14 = vld [vmem:[#allocation21_spill] sm:$0xff]  ;;  %v2068_v1 = vmax.bf16 %v4610_v24, %v2052_v39 }
 0x2f9   :  { %v2756_v32 = vpop.f32.mrf.mxu1  ;;  %v1873_v60 = vadd.f32 %v4607_v14, %v4606_v43  ;;  %p3079_p3 = por %p3078_p2, %p3077_p1 }
 0x2fa   :  { %v2757_v35 = vadd.f32 %v2756_v32, %v2755_v41  ;;  %v2920_v25 = vpop.permute.xlu0 %2919  ;;  %v2111_v51 = vpop.permute.xlu1 %2110 }
 0x2fb   :  { %v2758_v27 = vpop.f32.mrf.mxu1  ;;  %v2922_v43 = vunpack.i.h.bf16 %v2920_v25  ;;  %p3080_p4 = pnand %p3079_p3, %p3073_p0 }
 0x2fc   :  { %v2021_v21 = vadd.f32 %v2757_v35, %v1860_v47  ;;  %v4609_v47 = vld [vmem:[#allocation23_spill] sm:$0xff] }
 0x2fd   :  { %v2759_v59 = vpop.f32.mrf.mxu1  ;;  %v1876_v35 = vadd.f32 %v4609_v47, %v4608_v50  ;;  %v2921_v47 = vunpack.i.l.bf16 %v2920_v25  ;;  %v2324_v25 = vlaneseq }
 0x2fe   :  { %v2053_v62 = vpack.c.bf16 %v2021_v21, %v2018_v26  ;;  %v2760_v18 = vadd.f32 %v2759_v59, %v2758_v27  ;;  %v2925_v39 = vpop.permute.xlu0 %2924 }
 0x2ff   :  { %v2761_v45 = vpop.f32.mrf.mxu1 }
 0x300   :  { %v2026_v61 = vadd.f32 %v2760_v18, %v1865_v4  ;;  %v2063_v18 = vmax.bf16 %v4610_v24, %v2047_v55  ;;  %v2069_v4 = vmax.bf16 %v4610_v24, %v2053_v62 }
 0x301   :  { %v2762_v8 = vpop.f32.mrf.mxu1 }
 0x302   :  { %v2763_v42 = vadd.f32 %v2762_v8, %v2761_v45 }
 0x303   :  { %v2764_v31 = vpop.f32.mrf.mxu1 }
 0x304   :  { %v2029_v38 = vadd.f32 %v2763_v42, %v1868_v10 }
 0x305   :  { %v2765_v58 = vpop.f32.mrf.mxu1 }
 0x306   :  { %v2054_v41 = vpack.c.bf16 %v2029_v38, %v2026_v61  ;;  %v2766_v44 = vadd.f32 %v2765_v58, %v2764_v31  ;;  %v2116_v61 = vpop.permute.xlu1 %2115 }
 0x307   :  { %v2767_v32 = vpop.f32.mrf.mxu1 }
 0x308   :  { %v2034_v26 = vadd.f32 %v2766_v44, %v1873_v60  ;;  %v2070_v8 = vmax.bf16 %v4610_v24, %v2054_v41  ;;  %v2121_v44 = vpop.permute.xlu0 %2120 }
 0x309   :  { %v2768_v6 = vpop.f32.mrf.mxu1 }
 0x30a   :  { %v2769_v27 = vadd.f32 %v2768_v6, %v2767_v32 }
 0x30c   :  { %v2037_v21 = vadd.f32 %v2769_v27, %v1876_v35  ;;  %v2926_v27 = vunpack.i.l.bf16 %v2925_v39 }
 0x30e   :  { %v2055_v59 = vpack.c.bf16 %v2037_v21, %v2034_v26 }
 0x310   :  { %v2071_v45 = vmax.bf16 %v4610_v24, %v2055_v59  ;;  %v2927_v24 = vunpack.i.h.bf16 %v2925_v39 }
 0x312   :  { %2770 = vmatprep.subr.bf16.mxu0 %v2071_v45  ;;  %v2280_v45 = vpop.permute.xlu1 %2279 }
 0x313   :  { %2771 = vmatpush3.bf16.msra.mxu0 %v2063_v18 }
 0x314   :  { %2772 = vmatprep.subr.bf16.mxu0 %v2070_v8 }
 0x317   :  { %2773 = vmatpush3.bf16.msra.mxu0 %v2062_v37 }
 0x318   :  { %2774 = vmatprep.subr.bf16.mxu0 %v2069_v4 }
 0x31b   :  { %2775 = vmatpush3.bf16.msra.mxu0 %v2061_v22 }
 0x31c   :  { %2776 = vmatprep.subr.bf16.mxu0 %v2068_v1  ;;  %v2126_v1 = vpop.permute.xlu0 %2125 }
 0x31f   :  { %2777 = vmatpush3.bf16.msra.mxu0 %v2060_v7 }
 0x320   :  { %2778 = vmatprep.subr.bf16.mxu0 %v2067_v17 }
 0x323   :  { %2779 = vmatpush3.bf16.msra.mxu0 %v2059_v28 }
 0x324   :  { %2780 = vmatprep.subr.bf16.mxu0 %v2066_v19 }
 0x327   :  { %2781 = vmatpush3.bf16.msra.mxu0 %v2058_v57 }
 0x328   :  { %2782 = vmatprep.subr.bf16.mxu0 %v2065_v46 }
 0x32b   :  { %2783 = vmatpush3.bf16.msra.mxu0 %v2057_v33 }
 0x32c   :  { %2784 = vmatprep.subr.bf16.mxu0 %v2064_v29 }
 0x32f   :  { %2785 = vmatpush3.bf16.msra.mxu0 %v2056_v13 }
 0x332   :  { %2201 = vmatmul.mubr.bf16.vlgmr.msra.gmra.mxu0 %v3056_v16  ;;  %v2285_v16 = vpop.permute.xlu1 %2284 }
 0x333   :  { %2208 = vmatprep.mubr.bf16.mxu0 %v3059_v15 }
 0x33a   :  { %2209 = vmatmul.mubr.bf16.gmra.mxu0 %v3061_v30 }
 0x33b   :  { %2216 = vmatprep.mubr.bf16.mxu0 %v3062_v3 }
 0x342   :  { %2217 = vmatmul.mubr.bf16.gmra.mxu0 %v3064_v20 }
 0x343   :  { %2224 = vmatprep.mubr.bf16.mxu0 %v3065_v2 }
 0x34a   :  { %2225 = vmatmul.mubr.bf16.gmra.mxu0 %v3067_v53  ;;  %v2290_v53 = vpop.permute.xlu0 %2289 }
 0x34e   :  { %v2322_v39 = vpop.permute.xlu0 %2321 }
 0x3f2   :  { %v2786_v49 = vpop.f32.mrf.mxu0 }
 0x3f4   :  { %v2787_v11 = vpop.f32.mrf.mxu0 }
 0x3f5   :  { %v2788_v23 = vadd.f32 %v2787_v11, %v2786_v49 }
 0x3f6   :  { %v2789_v55 = vpop.f32.mrf.mxu0 }
 0x3f7   :  { %v2203_v42 = vadd.f32 %v2788_v23, %v2091_v48 }
 0x3f8   :  { %v2790_v54 = vpop.f32.mrf.mxu0 }
 0x3f9   :  { %v2791_v5 = vadd.f32 %v2790_v54, %v2789_v55  ;;  %v2233_v14 = vmax.f32 %v2203_v42, 0.0  ;;  %v2295_v55 = vpop.permute.xlu1 %2294 }
 0x3fa   :  { %v2792_v56 = vpop.f32.mrf.mxu0 }
 0x3fb   :  { %v2206_v0 = vadd.f32 %v2791_v5, %v2096_v52  ;;  %v2297_v8 = vmul.f32 %v2921_v47, %v2233_v14  ;;  %v2325_v5 = vshrl.u32 %v2324_v25, 7 }
 0x3fc   :  { %v2793_v63 = vpop.f32.mrf.mxu0 }
 0x3fd   :  { %v2794_v34 = vadd.f32 %v2793_v63, %v2792_v56  ;;  %v2234_v58 = vmax.f32 %v2206_v0, 0.0  ;;  %v2326_v23 = vsub.s32 0, %v2325_v5 }
 0x3fe   :  { %v2795_v12 = vpop.f32.mrf.mxu0 }
 0x3ff   :  { %v2211_v31 = vadd.f32 %v2794_v34, %v2101_v9  ;;  %v2298_v26 = vmul.f32 %v2922_v43, %v2234_v58  ;;  %v2327_v0 = vrot.slane %v2322_v39, %v2326_v23 }
 0x400   :  { %v2796_v62 = vpop.f32.mrf.mxu0 }
 0x401   :  { %v2797_v36 = vadd.f32 %v2796_v62, %v2795_v12  ;;  %v2235_v60 = vmax.f32 %v2211_v31, 0.0  ;;  %v2305_v17 = vadd.f32 %v2298_v26, %v2297_v8 }
 0x402   :  { %v2798_v10 = vpop.f32.mrf.mxu0 }
 0x403   :  { %v2214_v41 = vadd.f32 %v2797_v36, %v2106_v40  ;;  %v2299_v37 = vmul.f32 %v2926_v27, %v2235_v60 }
 0x404   :  { %v2799_v38 = vpop.f32.mrf.mxu0 }
 0x405   :  { %v2800_v32 = vadd.f32 %v2799_v38, %v2798_v10  ;;  %v2236_v21 = vmax.f32 %v2214_v41, 0.0  ;;  %v2306_v33 = vadd.f32 %v2305_v17, %v2299_v37 }
 0x406   :  { %v2801_v6 = vpop.f32.mrf.mxu0 }
 0x407   :  { %v2219_v50 = vadd.f32 %v2800_v32, %v2111_v51  ;;  %v2300_v28 = vmul.f32 %v2927_v24, %v2236_v21 }
 0x408   :  { %v2802_v35 = vpop.f32.mrf.mxu0 }
 0x409   :  { %v2803_v59 = vadd.f32 %v2802_v35, %v2801_v6  ;;  %v2237_v4 = vmax.f32 %v2219_v50, 0.0  ;;  %v2307_v30 = vadd.f32 %v2306_v33, %v2300_v28 }
 0x40a   :  { %v2804_v18 = vpop.f32.mrf.mxu0 }
 0x40b   :  { %v2222_v22 = vadd.f32 %v2803_v59, %v2116_v61  ;;  %v2301_v29 = vmul.f32 %v2280_v45, %v2237_v4 }
 0x40c   :  { %v2805_v7 = vpop.f32.mrf.mxu0 }
 0x40d   :  { %v2238_v19 = vmax.f32 %v2222_v22, 0.0  ;;  %v2806_v57 = vadd.f32 %v2805_v7, %v2804_v18  ;;  %v2308_v48 = vadd.f32 %v2307_v30, %v2301_v29 }
 0x40e   :  { %v2807_v46 = vpop.f32.mrf.mxu0 }
 0x40f   :  { %v2227_v13 = vadd.f32 %v2806_v57, %v2121_v44  ;;  %v2302_v3 = vmul.f32 %v2285_v16, %v2238_v19 }
 0x410   :  { %v2808_v15 = vpop.f32.mrf.mxu0 }
 0x411   :  { %v2239_v20 = vmax.f32 %v2227_v13, 0.0  ;;  %v2809_v2 = vadd.f32 %v2808_v15, %v2807_v46  ;;  %v2309_v9 = vadd.f32 %v2308_v48, %v2302_v3 }
 0x413   :  { %v2303_v52 = vmul.f32 %v2290_v53, %v2239_v20  ;;  %v2230_v49 = vadd.f32 %v2809_v2, %v2126_v1 }
 0x415   :  { %v2240_v11 = vmax.f32 %v2230_v49, 0.0  ;;  %v2310_v40 = vadd.f32 %v2309_v9, %v2303_v52 }
 0x417   :  { %v2304_v54 = vmul.f32 %v2295_v55, %v2240_v11 }
 0x419   :  { %v2311_v56 = vadd.f32 %v2310_v40, %v2304_v54 }
 0x41b   :  { %v2312_v63 = vrot.slane %v2311_v56, 4 }
 0x41d   :  { %v2313_v51 = vadd.f32 %v2312_v63, %v2311_v56 }
 0x41f   :  { %v2314_v12 = vrot.slane %v2313_v51, 2 }
 0x421   :  { %v2315_v34 = vadd.f32 %v2314_v12, %v2313_v51 }
 0x423   :  { %v2316_v62 = vrot.slane %v2315_v34, 1 }
 0x425   :  { %v2317_v36 = vadd.f32 %v2316_v62, %v2315_v34 }
 0x427   :  { %v2328_v10 = vadd.f32 %v2327_v0, %v2317_v36 }
 0x429   :  { %v2486_v42 = vmul.f32 -1.442695, %v2328_v10 }
 0x42b   :  { %3068 = vpow2.f32 %v2486_v42 }
 0x438   :  { %v3069_v31 = vpop.eup %3068 }
 0x439   :  { %v2332_v61 = vadd.f32 1.0, %v3069_v31 }
 0x43b   :  { %3070 = vrcp.f32 %v2332_v61 }
 0x448   :  { %v3071_v38 = vpop.eup %3070 }
 0x449   :  { %2335 = vst [vmem:[#allocation3] sm:$0x1] %v3071_v38 }
 0x44a   :  { %3083 = shalt.err (!%p3080_p4)
}
 0x44b   :  { %2345 = dma.vmem_to_hbm [thread:$0]  %s2343_s20, 16, %s4495_s9, [#allocation4]  }
 0x44c   :  { %3092 = dma.done.wait [#allocation4], 16  }
 0x44d   :  { %3093 = vsyncadd [#allocation4], 4294967280 }
 0x44e   :  { %2349 = vsyncpa [#allocation4], 1 }

</bundles_post_ra>
